<compile_context>
chip_gen: v7x
topology: tpu7x:2x2x1
jax: 0.10.0
libtpu: 0.0.40
codegen_flags: <defaults>
</compile_context>

<pallas_src>
import functools

import jax
import jax.numpy as jnp
from jax import lax
from jax.experimental import pallas as pl
from jax.experimental.pallas import tpu as pltpu


def _round_up(v: int, m: int) -> int:
    return (v + m - 1) // m * m


def _sgat_kernel(x_ref, row_ref, col_ref, ea_ref, w1_ref, w2_ref, b_ref,
                 invdeg_ref, out_ref, h1_ref, h2_ref, acc_ref, *, fout: int):
    # x_ref:      [Np, Fin]  f32   node features (whole array, VMEM resident)
    # row/col:    [tE, 1]    int32 edge-tile of source / target node ids
    # ea_ref:     [tE, 1]    f32   edge attribute (0 on padded edges)
    # w1/w2_ref:  [Fin, Fp]  f32   W split in two halves, F_out zero-padded to Fp
    # b_ref:      [1, Fp]    f32
    # invdeg_ref: [Np, 1]    f32   1 / max(out-degree, 1) (precomputed)
    # out_ref:    [Np, Fp]   f32   lane-dense padded output
    # h1/h2/acc:  [Np, Fp]   f32   VMEM scratch persisting across edge tiles
    k = pl.program_id(0)
    np_, fp = out_ref.shape
    te = row_ref.shape[0]

    @pl.when(k == 0)
    def _init():
        x = x_ref[...]
        h1_ref[...] = jnp.dot(x, w1_ref[...], preferred_element_type=jnp.float32)
        h2 = jnp.dot(x, w2_ref[...], preferred_element_type=jnp.float32)
        # Ones-column at lane `fout` (inside the zero padding): the scatter
        # below then also accumulates sum_j(ea_ij) per node for free, which is
        # exactly the factor multiplying h1 at finalize (replaces the x[row]
        # one-hot gather entirely).
        lane = lax.broadcasted_iota(jnp.int32, (np_, fp), 1)
        h2_ref[...] = jnp.where(lane == fout, 1.0, h2)
        acc_ref[...] = jnp.zeros_like(acc_ref)

    node_iota = lax.broadcasted_iota(jnp.int32, (te, np_), 1)
    onehot_col = (col_ref[...] == node_iota).astype(jnp.float32)       # [tE, Np]
    # Row one-hot pre-scaled by the edge attribute (folds the per-edge scale
    # into the scatter weights; padded edges have ea == 0 -> no contribution).
    w_onehot_row = jnp.where(row_ref[...] == node_iota, ea_ref[...], 0.0)

    # Gather of projected neighbour features: one MXU matmul per edge tile.
    g = jnp.dot(onehot_col, h2_ref[...], preferred_element_type=jnp.float32)

    # Segment-sum scatter over `row`: contract the edge axis directly
    # (dimension_numbers (((0,),(0,)),((),())) -> no explicit [tE,Np] transpose).
    acc_ref[...] += lax.dot_general(
        w_onehot_row, g, (((0,), (0,)), ((), ())),
        preferred_element_type=jnp.float32)

    @pl.when(k == pl.num_programs(0) - 1)
    def _finalize():
        acc = acc_ref[...]
        ea_sum = acc[:, fout:fout + 1]                 # [Np, 1] sum of ea per node
        sums = h1_ref[...] * ea_sum + acc              # x[row]-side contribution
        out_ref[...] = sums * invdeg_ref[...] + b_ref[...]


def sgat_forward(x, edge_index, edge_attr, weight, bias=None, *, edge_tile=512):
    """Pallas TPU implementation of SGraphAttentionLayer.forward (undirected=True)."""
    # TODO(synk): undirected=False path (second scatter_mean over `col`) not implemented.
    N, fin = x.shape
    E = edge_index.shape[1]
    fout = weight.shape[1]

    if edge_attr.ndim == 1:
        ea = edge_attr.reshape(E, 1)
    else:
        # TODO(synk): only scalar (per-edge) edge attributes are supported here.
        ea = edge_attr[:, :1]
    ea = ea.astype(jnp.float32)

    npad = _round_up(max(N, 8), 8)
    fpad = _round_up(fout + 1, 128)          # +1 spare lane holds the ea-sum column
    epad = _round_up(max(E, edge_tile), edge_tile)

    xp = jnp.zeros((npad, fin), jnp.float32).at[:N].set(x.astype(jnp.float32))

    row = edge_index[0].astype(jnp.int32)
    col = edge_index[1].astype(jnp.int32)
    row_p = jnp.zeros((epad, 1), jnp.int32).at[:E, 0].set(row)
    col_p = jnp.zeros((epad, 1), jnp.int32).at[:E, 0].set(col)
    ea_p = jnp.zeros((epad, 1), jnp.float32).at[:E].set(ea)   # padded edges: ea = 0

    w = weight.astype(jnp.float32)
    w1 = jnp.zeros((fin, fpad), jnp.float32).at[:, :fout].set(w[:fin])
    w2 = jnp.zeros((fin, fpad), jnp.float32).at[:, :fout].set(w[fin:])
    if bias is None:
        b = jnp.zeros((1, fpad), jnp.float32)
    else:
        b = jnp.zeros((1, fpad), jnp.float32).at[0, :fout].set(
            bias.astype(jnp.float32).reshape(fout))

    # 1 / max(out-degree, 1): feature-independent, so it is precomputed here
    # instead of an in-kernel ones-matmul + divide.
    deg = jax.ops.segment_sum(jnp.ones((E,), jnp.float32), row, num_segments=npad)
    inv_deg = (1.0 / jnp.maximum(deg, 1.0)).reshape(npad, 1)

    grid = (epad // edge_tile,)

    # Explicit VMEM budget derived from the block sizes (fits v7x's 64 MiB).
    est = 4 * (npad * fin + 2 * fin * fpad + fpad + npad
               + 3 * 2 * edge_tile            # row/col/ea, double-buffered
               + 2 * npad * fpad              # output block
               + 3 * npad * fpad)             # h1 / h2 / acc scratch
    vmem_limit = min(max(2 * est, 8 * 1024 * 1024), 64 * 1024 * 1024)

    const = lambda k: (0, 0)
    edge = lambda k: (k, 0)
    out_pad = pl.pallas_call(
        functools.partial(_sgat_kernel, fout=fout),
        out_shape=jax.ShapeDtypeStruct((npad, fpad), jnp.float32),
        grid=grid,
        in_specs=[
            pl.BlockSpec((npad, fin), const),        # x
            pl.BlockSpec((edge_tile, 1), edge),      # row ids (edge-tiled)
            pl.BlockSpec((edge_tile, 1), edge),      # col ids (edge-tiled)
            pl.BlockSpec((edge_tile, 1), edge),      # edge_attr (edge-tiled)
            pl.BlockSpec((fin, fpad), const),        # W1 (lane-padded)
            pl.BlockSpec((fin, fpad), const),        # W2 (lane-padded)
            pl.BlockSpec((1, fpad), const),          # bias (lane-padded)
            pl.BlockSpec((npad, 1), const),          # 1/deg
        ],
        out_specs=pl.BlockSpec((npad, fpad), const),
        scratch_shapes=[pltpu.VMEM((npad, fpad), jnp.float32)] * 3,
        compiler_params=pltpu.CompilerParams(
            dimension_semantics=("arbitrary",),      # edge axis is a reduction
            vmem_limit_bytes=vmem_limit,
        ),
    )(xp, row_p, col_p, ea_p, w1, w2, b, inv_deg)

    return out_pad[:N, :fout]


def sgat_reference(x, edge_index, edge_attr, weight, bias):
    """Pure-JAX reference mirroring the PyTorch forward (undirected=True)."""
    row, col = edge_index[0], edge_index[1]
    ea = edge_attr[:, None] if edge_attr.ndim == 1 else edge_attr
    alpha = jnp.matmul(jnp.concatenate([x[row], x[col]], axis=-1), weight,
                       precision=jax.lax.Precision.HIGHEST)
    alpha = ea * alpha
    N = x.shape[0]
    sums = jax.ops.segment_sum(alpha, row, num_segments=N)
    counts = jax.ops.segment_sum(jnp.ones((row.shape[0],), jnp.float32), row,
                                 num_segments=N)
    out = sums / jnp.maximum(counts, 1.0)[:, None]
    return out + bias


if __name__ == "__main__":
    key = jax.random.PRNGKey(0)
    k_x, k_w, k_b, k_e, k_ea = jax.random.split(key, 5)

    # Small graph consistent with the module: N nodes, F_in features, F_out out.
    N, F_in, F_out, E = 16, 8, 32, 24

    x = jax.random.normal(k_x, (N, F_in), dtype=jnp.float32)

    # Parameter init mimicking reset_parameters(): uniform(-1/sqrt(2*in), 1/sqrt(2*in)).
    size = 2 * F_in
    bound = 1.0 / float(size) ** 0.5
    weight = jax.random.uniform(k_w, (2 * F_in, F_out), jnp.float32, -bound, bound)
    bias = jax.random.uniform(k_b, (F_out,), jnp.float32, -bound, bound)

    edge_index = jax.random.randint(k_e, (2, E), 0, N, dtype=jnp.int32)
    edge_attr = jax.random.uniform(k_ea, (E,), jnp.float32)  # 1-D -> [E,1]

    ref = sgat_reference(x, edge_index, edge_attr, weight, bias)

    # Single edge tile (whole edge list in one grid step).
    out = jax.block_until_ready(sgat_forward(x, edge_index, edge_attr, weight, bias))
    assert out.shape == (N, F_out)
    assert jnp.allclose(out, ref, atol=1e-4, rtol=1e-4), "mismatch vs reference (1 tile)"

    # Multi-tile run: exercises the gridded edge reduction / VMEM accumulator path.
    out_tiled = jax.block_until_ready(
        sgat_forward(x, edge_index, edge_attr, weight, bias, edge_tile=8))
    assert jnp.allclose(out_tiled, ref, atol=1e-4, rtol=1e-4), "mismatch vs reference (tiled)"

    print("KERNEL_OK")
</pallas_src>

<mosaic_0001>
module attributes {stable_mosaic.version = 11 : i64} {
  func.func @_sgat_kernel(%arg0: i32, %arg1: memref<16x8xf32, #tpu.memory_space<vmem>>, %arg2: memref<512x1xi32, #tpu.memory_space<vmem>>, %arg3: memref<512x1xi32, #tpu.memory_space<vmem>>, %arg4: memref<512x1xf32, #tpu.memory_space<vmem>>, %arg5: memref<8x128xf32, #tpu.memory_space<vmem>>, %arg6: memref<8x128xf32, #tpu.memory_space<vmem>>, %arg7: memref<1x128xf32, #tpu.memory_space<vmem>>, %arg8: memref<16x1xf32, #tpu.memory_space<vmem>>, %arg9: memref<16x128xf32, #tpu.memory_space<vmem>>, %arg10: memref<16x128xf32, #tpu.memory_space<vmem>>, %arg11: memref<16x128xf32, #tpu.memory_space<vmem>>, %arg12: memref<16x128xf32, #tpu.memory_space<vmem>>) attributes {dimension_semantics = [#tpu.dimension_semantics<arbitrary>], iteration_bounds = array<i64: 1>, scalar_prefetch = 0 : i64, scratch_operands = 3 : i64, tpu.core_type = #tpu.core_type<tc>, window_params = [{pipeline_mode = #tpu.pipeline_mode<synchronous>, transform_indices = @transform_0, window_bounds = array<i64: 16, 8>}, {transform_indices = @transform_1, window_bounds = array<i64: 512, 1>}, {transform_indices = @transform_2, window_bounds = array<i64: 512, 1>}, {transform_indices = @transform_3, window_bounds = array<i64: 512, 1>}, {pipeline_mode = #tpu.pipeline_mode<synchronous>, transform_indices = @transform_4, window_bounds = array<i64: 8, 128>}, {pipeline_mode = #tpu.pipeline_mode<synchronous>, transform_indices = @transform_5, window_bounds = array<i64: 8, 128>}, {pipeline_mode = #tpu.pipeline_mode<synchronous>, transform_indices = @transform_6, window_bounds = array<i64: 1, 128>}, {pipeline_mode = #tpu.pipeline_mode<synchronous>, transform_indices = @transform_7, window_bounds = array<i64: 16, 1>}, {pipeline_mode = #tpu.pipeline_mode<synchronous>, transform_indices = @transform_8, window_bounds = array<i64: 16, 128>}]} {
    %c0_i32 = arith.constant 0 : i32
    %0 = arith.cmpi eq, %arg0, %c0_i32 : i32
    %1 = arith.extui %0 : i1 to i32
    %c0_i32_0 = arith.constant 0 : i32
    %2 = arith.cmpi ne, %1, %c0_i32_0 : i32
    scf.if %2 {
      %c0_16 = arith.constant 0 : index
      %c0_17 = arith.constant 0 : index
      %26 = vector.load %arg1[%c0_16, %c0_17] : memref<16x8xf32, #tpu.memory_space<vmem>>, vector<16x8xf32>
      %c0_18 = arith.constant 0 : index
      %c0_19 = arith.constant 0 : index
      %27 = vector.load %arg5[%c0_18, %c0_19] : memref<8x128xf32, #tpu.memory_space<vmem>>, vector<8x128xf32>
      %cst_20 = arith.constant dense<0.000000e+00> : vector<16x128xf32>
      %28 = tpu.matmul %26, %27, %cst_20 {dimension_numbers = #tpu.dot_dimension_numbers<[1], [0], [0], [1], [0, 0, 1, 1], [], []>} : vector<16x8xf32>, vector<8x128xf32>, vector<16x128xf32> -> vector<16x128xf32>
      %c0_21 = arith.constant 0 : index
      %c0_22 = arith.constant 0 : index
      %29 = vector.load %arg10[%c0_21, %c0_22] : memref<16x128xf32, #tpu.memory_space<vmem>>, vector<16x128xf32>
      tpu.vector_store %arg10[%c0_21, %c0_22], %28 {strides = array<i32>} : memref<16x128xf32, #tpu.memory_space<vmem>>, vector<16x128xf32>,
      %c0_23 = arith.constant 0 : index
      %c0_24 = arith.constant 0 : index
      %30 = vector.load %arg6[%c0_23, %c0_24] : memref<8x128xf32, #tpu.memory_space<vmem>>, vector<8x128xf32>
      %cst_25 = arith.constant dense<0.000000e+00> : vector<16x128xf32>
      %31 = tpu.matmul %26, %30, %cst_25 {dimension_numbers = #tpu.dot_dimension_numbers<[1], [0], [0], [1], [0, 0, 1, 1], [], []>} : vector<16x8xf32>, vector<8x128xf32>, vector<16x128xf32> -> vector<16x128xf32>
      %32 = tpu.iota {dimensions = array<i32: 1>} : vector<16x128xi32>
      %c32_i32 = arith.constant 32 : i32
      %33 = vector.broadcast %c32_i32 : i32 to vector<16x128xi32>
      %34 = arith.cmpi eq, %32, %33 : vector<16x128xi32>
      %cst_26 = arith.constant 1.000000e+00 : f32
      %35 = vector.broadcast %cst_26 : f32 to vector<16x128xf32>
      %36 = arith.select %34, %35, %31 : vector<16x128xi1>, vector<16x128xf32>
      %c0_27 = arith.constant 0 : index
      %c0_28 = arith.constant 0 : index
      %37 = vector.load %arg11[%c0_27, %c0_28] : memref<16x128xf32, #tpu.memory_space<vmem>>, vector<16x128xf32>
      tpu.vector_store %arg11[%c0_27, %c0_28], %36 {strides = array<i32>} : memref<16x128xf32, #tpu.memory_space<vmem>>, vector<16x128xf32>,
      %cst_29 = arith.constant 0.000000e+00 : f32
      %38 = vector.broadcast %cst_29 : f32 to vector<16x128xf32>
      %c0_30 = arith.constant 0 : index
      %c0_31 = arith.constant 0 : index
      %39 = vector.load %arg12[%c0_30, %c0_31] : memref<16x128xf32, #tpu.memory_space<vmem>>, vector<16x128xf32>
      tpu.vector_store %arg12[%c0_30, %c0_31], %38 {strides = array<i32>} : memref<16x128xf32, #tpu.memory_space<vmem>>, vector<16x128xf32>,
    } else {
    }
    %3 = tpu.iota {dimensions = array<i32: 1>} : vector<512x16xi32>
    %c0 = arith.constant 0 : index
    %c0_1 = arith.constant 0 : index
    %4 = vector.load %arg3[%c0, %c0_1] : memref<512x1xi32, #tpu.memory_space<vmem>>, vector<512x1xi32>
    %5 = vector.broadcast %4 : vector<512x1xi32> to vector<512x16xi32>
    %6 = arith.cmpi eq, %5, %3 : vector<512x16xi32>
    %7 = arith.extui %6 : vector<512x16xi1> to vector<512x16xi32>
    %8 = arith.sitofp %7 : vector<512x16xi32> to vector<512x16xf32>
    %c0_2 = arith.constant 0 : index
    %c0_3 = arith.constant 0 : index
    %9 = vector.load %arg2[%c0_2, %c0_3] : memref<512x1xi32, #tpu.memory_space<vmem>>, vector<512x1xi32>
    %10 = vector.broadcast %9 : vector<512x1xi32> to vector<512x16xi32>
    %11 = arith.cmpi eq, %10, %3 : vector<512x16xi32>
    %c0_4 = arith.constant 0 : index
    %c0_5 = arith.constant 0 : index
    %12 = vector.load %arg4[%c0_4, %c0_5] : memref<512x1xf32, #tpu.memory_space<vmem>>, vector<512x1xf32>
    %cst = arith.constant 0.000000e+00 : f32
    %13 = vector.shape_cast %12 : vector<512x1xf32> to vector<512x1xf32>
    %14 = vector.broadcast %13 : vector<512x1xf32> to vector<512x16xf32>
    %15 = vector.broadcast %cst : f32 to vector<512x16xf32>
    %16 = arith.select %11, %14, %15 : vector<512x16xi1>, vector<512x16xf32>
    %c0_6 = arith.constant 0 : index
    %c0_7 = arith.constant 0 : index
    %17 = vector.load %arg11[%c0_6, %c0_7] : memref<16x128xf32, #tpu.memory_space<vmem>>, vector<16x128xf32>
    %cst_8 = arith.constant dense<0.000000e+00> : vector<512x128xf32>
    %18 = tpu.matmul %8, %17, %cst_8 {dimension_numbers = #tpu.dot_dimension_numbers<[1], [0], [0], [1], [0, 0, 1, 1], [], []>} : vector<512x16xf32>, vector<16x128xf32>, vector<512x128xf32> -> vector<512x128xf32>
    %c0_9 = arith.constant 0 : index
    %c0_10 = arith.constant 0 : index
    %19 = vector.load %arg12[%c0_9, %c0_10] : memref<16x128xf32, #tpu.memory_space<vmem>>, vector<16x128xf32>
    %cst_11 = arith.constant dense<0.000000e+00> : vector<16x128xf32>
    %20 = tpu.matmul %16, %18, %cst_11 {dimension_numbers = #tpu.dot_dimension_numbers<[0], [0], [1], [1], [0, 1, 1, 1], [], []>} : vector<512x16xf32>, vector<512x128xf32>, vector<16x128xf32> -> vector<16x128xf32>
    %21 = arith.addf %19, %20 : vector<16x128xf32>
    %c0_12 = arith.constant 0 : index
    %c0_13 = arith.constant 0 : index
    %22 = vector.load %arg12[%c0_12, %c0_13] : memref<16x128xf32, #tpu.memory_space<vmem>>, vector<16x128xf32>
    tpu.vector_store %arg12[%c0_12, %c0_13], %21 {strides = array<i32>} : memref<16x128xf32, #tpu.memory_space<vmem>>, vector<16x128xf32>,
    %c0_i32_14 = arith.constant 0 : i32
    %23 = arith.cmpi eq, %arg0, %c0_i32_14 : i32
    %24 = arith.extui %23 : i1 to i32
    %c0_i32_15 = arith.constant 0 : i32
    %25 = arith.cmpi ne, %24, %c0_i32_15 : i32
    scf.if %25 {
      %c0_16 = arith.constant 0 : index
      %c0_17 = arith.constant 0 : index
      %26 = vector.load %arg12[%c0_16, %c0_17] : memref<16x128xf32, #tpu.memory_space<vmem>>, vector<16x128xf32>
      %27 = vector.extract_strided_slice %26 {offsets = [0, 32], sizes = [16, 1], strides = [1, 1]} : vector<16x128xf32> to vector<16x1xf32>
      %c0_18 = arith.constant 0 : index
      %c0_19 = arith.constant 0 : index
      %28 = vector.load %arg10[%c0_18, %c0_19] : memref<16x128xf32, #tpu.memory_space<vmem>>, vector<16x128xf32>
      %29 = vector.broadcast %27 : vector<16x1xf32> to vector<16x128xf32>
      %30 = arith.mulf %28, %29 : vector<16x128xf32>
      %31 = arith.addf %30, %26 : vector<16x128xf32>
      %c0_20 = arith.constant 0 : index
      %c0_21 = arith.constant 0 : index
      %32 = vector.load %arg8[%c0_20, %c0_21] : memref<16x1xf32, #tpu.memory_space<vmem>>, vector<16x1xf32>
      %33 = vector.broadcast %32 : vector<16x1xf32> to vector<16x128xf32>
      %34 = arith.mulf %31, %33 : vector<16x128xf32>
      %c0_22 = arith.constant 0 : index
      %c0_23 = arith.constant 0 : index
      %35 = vector.load %arg7[%c0_22, %c0_23] : memref<1x128xf32, #tpu.memory_space<vmem>>, vector<1x128xf32>
      %36 = vector.broadcast %35 : vector<1x128xf32> to vector<16x128xf32>
      %37 = arith.addf %34, %36 : vector<16x128xf32>
      %c0_24 = arith.constant 0 : index
      %c0_25 = arith.constant 0 : index
      %38 = vector.load %arg9[%c0_24, %c0_25] : memref<16x128xf32, #tpu.memory_space<vmem>>, vector<16x128xf32>
      tpu.vector_store %arg9[%c0_24, %c0_25], %37 {strides = array<i32>} : memref<16x128xf32, #tpu.memory_space<vmem>>, vector<16x128xf32>,
    } else {
    }
    return
  }
  func.func @transform_0(%arg0: i32) -> (i32, i32) {
    %c0_i32 = arith.constant 0 : i32
    %c0_i32_0 = arith.constant 0 : i32
    %c0_i32_1 = arith.constant 0 : i32
    return %c0_i32, %c0_i32_0 : i32, i32
  }
  func.func @transform_1(%arg0: i32) -> (i32, i32) {
    %c0_i32 = arith.constant 0 : i32
    %c0_i32_0 = arith.constant 0 : i32
    return %arg0, %c0_i32 : i32, i32
  }
  func.func @transform_2(%arg0: i32) -> (i32, i32) {
    %c0_i32 = arith.constant 0 : i32
    %c0_i32_0 = arith.constant 0 : i32
    return %arg0, %c0_i32 : i32, i32
  }
  func.func @transform_3(%arg0: i32) -> (i32, i32) {
    %c0_i32 = arith.constant 0 : i32
    %c0_i32_0 = arith.constant 0 : i32
    return %arg0, %c0_i32 : i32, i32
  }
  func.func @transform_4(%arg0: i32) -> (i32, i32) {
    %c0_i32 = arith.constant 0 : i32
    %c0_i32_0 = arith.constant 0 : i32
    %c0_i32_1 = arith.constant 0 : i32
    return %c0_i32, %c0_i32_0 : i32, i32
  }
  func.func @transform_5(%arg0: i32) -> (i32, i32) {
    %c0_i32 = arith.constant 0 : i32
    %c0_i32_0 = arith.constant 0 : i32
    %c0_i32_1 = arith.constant 0 : i32
    return %c0_i32, %c0_i32_0 : i32, i32
  }
  func.func @transform_6(%arg0: i32) -> (i32, i32) {
    %c0_i32 = arith.constant 0 : i32
    %c0_i32_0 = arith.constant 0 : i32
    %c0_i32_1 = arith.constant 0 : i32
    return %c0_i32, %c0_i32_0 : i32, i32
  }
  func.func @transform_7(%arg0: i32) -> (i32, i32) {
    %c0_i32 = arith.constant 0 : i32
    %c0_i32_0 = arith.constant 0 : i32
    %c0_i32_1 = arith.constant 0 : i32
    return %c0_i32, %c0_i32_0 : i32, i32
  }
  func.func @transform_8(%arg0: i32) -> (i32, i32) {
    %c0_i32 = arith.constant 0 : i32
    %c0_i32_0 = arith.constant 0 : i32
    %c0_i32_1 = arith.constant 0 : i32
    return %c0_i32, %c0_i32_0 : i32, i32
  }
}

</mosaic_0001>

<bundles_post_ra>
// kernel: tpu_custom_call.1
= control target key start
LH: loop header
LB: loop body
LE: loop exit
PB: predicated region body
PF: predicated region fallthrough
CT: control target
= control target key end

     0   :  { %v4651_v3 = vmov 0   ;;  %vm37_vm0 = vcmask 64512   ;;  %s4642_s0 = inlined_call_operand.vmem [shape: f32[16,8], index: 0, kind: input, shape index: {}]   ;;  %s4643_s1 = inlined_call_operand.vmem [shape: s32[512,1], index: 1, kind: input, shape index: {}]   ;;  %s4644_s2 = inlined_call_operand.vmem [shape: s32[512,1], index: 2, kind: input, shape index: {}]   ;;  %s4645_s3 = inlined_call_operand.vmem [shape: f32[512,1], index: 3, kind: input, shape index: {}]   ;;  %s4646_s4 = inlined_call_operand.vmem [shape: f32[8,128], index: 4, kind: input, shape index: {}]   ;;  %s4647_s5 = inlined_call_operand.vmem [shape: f32[8,128], index: 5, kind: input, shape index: {}]   ;;  %s4648_s6 = inlined_call_operand.vmem [shape: f32[1,128], index: 6, kind: input, shape index: {}]   ;;  %s4649_s7 = inlined_call_operand.vmem [shape: f32[16,1], index: 7, kind: input, shape index: {}]   ;;  %s4650_s8 = inlined_call_operand.hbm [shape: f32[16,128], index: 8, kind: output, shape index: {}]  }
   0x1   :  { %v121_v0 = vld [vmem:[%s4647_s5] sm:$0xff]  ;;  %v210_v1 = vld [vmem:[%s4644_s2 + $0x10] sm:$0xff]  ;;  %2818 = vset.pattern.permute.xlu1 %v4651_v3  ;;  %2817 = vset.pattern.permute.xlu0 %v4651_v3  ;;  %v35_v5 = vld [vmem:[%s4642_s0 + $0x8] sm:$0xff] }
   0x2   :  { %v208_v2 = vld [vmem:[%s4644_s2] sm:$0xff]  ;;  %2636 = vmatprep.subr.mxu1 %v121_v0  ;;  %279 = vperm.xlu1 %2818, %v210_v1   ;;  %v211_v6 = vld [vmem:[%s4644_s2 + $0x18] sm:$0xff]  ;;  %v209_v7 = vld [vmem:[%s4644_s2 + $0x8] sm:$0xff] }
   0x3   :  { %v34_v4 = vld [vmem:[%s4642_s0] sm:$0xff]  ;;  %273 = vperm.xlu0 %2817, %v208_v2   ;;  %2637 = vmatpush3.msra.mxu1 %v121_v0  ;;  %v213_v8 = vld [vmem:[%s4644_s2 + $0x28] sm:$0xff]  ;;  %v215_v10 = vld [vmem:[%s4644_s2 + $0x38] sm:$0xff] }
   0x4   :  { %2638 = vmatprep.mubr.msk.f32.mxu1 %vm37_vm0, %v34_v4  ;;  %2633 = vmatprep.mubr.msk.f32.mxu0 %vm37_vm0, %v34_v4  ;;  %v212_v9 = vld [vmem:[%s4644_s2 + $0x20] sm:$0xff]  ;;  %v214_v11 = vld [vmem:[%s4644_s2 + $0x30] sm:$0xff]  ;;  %v217_v12 = vld [vmem:[%s4644_s2 + $0x48] sm:$0xff] }
   0x5   :  { %2639 = vmatmul.mubr.msk.f32.vlgmr.msra.gmra.mrb[0].mxu1 %vm37_vm0, %v35_v5  ;;  %v216_v13 = vld [vmem:[%s4644_s2 + $0x40] sm:$0xff]  ;;  %v219_v14 = vld [vmem:[%s4644_s2 + $0x58] sm:$0xff]  ;;  %v218_v15 = vld [vmem:[%s4644_s2 + $0x50] sm:$0xff] }
   0x6   :  { %282 = vperm.xlu1 %2818, %v211_v6   ;;  %v221_v16 = vld [vmem:[%s4644_s2 + $0x68] sm:$0xff]  ;;  %v36_v17 = vld [vmem:[%s4646_s4] sm:$0xff] }
   0x7   :  { %276 = vperm.xlu0 %2817, %v209_v7   ;;  %v220_v18 = vld [vmem:[%s4644_s2 + $0x60] sm:$0xff]  ;;  %2631 = vmatprep.subr.mxu0 %v36_v17 }
   0x8   :  { %2632 = vmatpush3.msra.mxu0 %v36_v17 }
   0x9   :  { %2634 = vmatmul.mubr.msk.f32.vlgmr.msra.gmra.mrb[0].mxu0 %vm37_vm0, %v35_v5 }
   0xa   :  { %288 = vperm.xlu1 %2818, %v213_v8  }
   0xb   :  { %285 = vperm.xlu0 %2817, %v212_v9  }
   0xe   :  { %294 = vperm.xlu1 %2818, %v215_v10  }
   0xf   :  { %291 = vperm.xlu0 %2817, %v214_v11  }
  0x12   :  { %300 = vperm.xlu1 %2818, %v217_v12  }
  0x13   :  { %297 = vperm.xlu0 %2817, %v216_v13  }
  0x16   :  { %306 = vperm.xlu1 %2818, %v219_v14  }
  0x17   :  { %303 = vperm.xlu0 %2817, %v218_v15  }
  0x1a   :  { %312 = vperm.xlu1 %2818, %v221_v16  }
  0x1b   :  { %13 = vsyncpa [#allocation6], 0  ;;  %309 = vperm.xlu0 %2817, %v220_v18   ;;  %v223_v19 = vld [vmem:[%s4644_s2 + $0x78] sm:$0xff]  ;;  %v222_v20 = vld [vmem:[%s4644_s2 + $0x70] sm:$0xff]  ;;  %v197_v5 = vlaneseq  ;;  %vm1426_vm1 = vcmask 130048   ;;  %v3092_v13 = vmov 0.0  }
  0x1c   :  { %v225_v21 = vld [vmem:[%s4644_s2 + $0x88] sm:$0xff]  ;;  %v224_v22 = vld [vmem:[%s4644_s2 + $0x80] sm:$0xff]  ;;  %v227_v23 = vld [vmem:[%s4644_s2 + $0x98] sm:$0xff] }
  0x1d   :  { %v226_v24 = vld [vmem:[%s4644_s2 + $0x90] sm:$0xff]  ;;  %v229_v25 = vld [vmem:[%s4644_s2 + $0xa8] sm:$0xff]  ;;  %v228_v26 = vld [vmem:[%s4644_s2 + $0xa0] sm:$0xff]  ;;  %v3352_v7 = vand.u32 127, %v197_v5 }
  0x1e   :  { %318 = vperm.xlu1 %2818, %v223_v19   ;;  %v231_v27 = vld [vmem:[%s4644_s2 + $0xb8] sm:$0xff]  ;;  %v230_v28 = vld [vmem:[%s4644_s2 + $0xb0] sm:$0xff]  ;;  %v233_v29 = vld [vmem:[%s4644_s2 + $0xc8] sm:$0xff] }
  0x1f   :  { %315 = vperm.xlu0 %2817, %v222_v20   ;;  %v232_v30 = vld [vmem:[%s4644_s2 + $0xc0] sm:$0xff]  ;;  %v235_v31 = vld [vmem:[%s4644_s2 + $0xd8] sm:$0xff]  ;;  %v234_v32 = vld [vmem:[%s4644_s2 + $0xd0] sm:$0xff]  ;;  %vm199_vm3 = vcmp.eq.s32.totalorder %v3352_v7, 32 }
  0x20   :  { %v237_v33 = vld [vmem:[%s4644_s2 + $0xe8] sm:$0xff]  ;;  %v236_v34 = vld [vmem:[%s4644_s2 + $0xe0] sm:$0xff]  ;;  %v239_v35 = vld [vmem:[%s4644_s2 + $0xf8] sm:$0xff] }
  0x21   :  { %v238_v36 = vld [vmem:[%s4644_s2 + $0xf0] sm:$0xff]  ;;  %v241_v37 = vld [vmem:[%s4644_s2 + $0x108] sm:$0xff]  ;;  %v240_v38 = vld [vmem:[%s4644_s2 + $0x100] sm:$0xff] }
  0x22   :  { %324 = vperm.xlu1 %2818, %v225_v21   ;;  %v243_v39 = vld [vmem:[%s4644_s2 + $0x118] sm:$0xff]  ;;  %v242_v40 = vld [vmem:[%s4644_s2 + $0x110] sm:$0xff]  ;;  %v245_v41 = vld [vmem:[%s4644_s2 + $0x128] sm:$0xff] }
  0x23   :  { %321 = vperm.xlu0 %2817, %v224_v22   ;;  %v244_v42 = vld [vmem:[%s4644_s2 + $0x120] sm:$0xff]  ;;  %v247_v43 = vld [vmem:[%s4644_s2 + $0x138] sm:$0xff]  ;;  %v246_v44 = vld [vmem:[%s4644_s2 + $0x130] sm:$0xff] }
  0x24   :  { %v249_v45 = vld [vmem:[%s4644_s2 + $0x148] sm:$0xff]  ;;  %v248_v46 = vld [vmem:[%s4644_s2 + $0x140] sm:$0xff]  ;;  %v251_v47 = vld [vmem:[%s4644_s2 + $0x158] sm:$0xff] }
  0x25   :  { %v250_v48 = vld [vmem:[%s4644_s2 + $0x150] sm:$0xff]  ;;  %v253_v49 = vld [vmem:[%s4644_s2 + $0x168] sm:$0xff]  ;;  %v252_v50 = vld [vmem:[%s4644_s2 + $0x160] sm:$0xff] }
  0x26   :  { %330 = vperm.xlu1 %2818, %v227_v23   ;;  %v255_v51 = vld [vmem:[%s4644_s2 + $0x178] sm:$0xff]  ;;  %v254_v52 = vld [vmem:[%s4644_s2 + $0x170] sm:$0xff]  ;;  %v257_v53 = vld [vmem:[%s4644_s2 + $0x188] sm:$0xff] }
  0x27   :  { %327 = vperm.xlu0 %2817, %v226_v24   ;;  %v256_v54 = vld [vmem:[%s4644_s2 + $0x180] sm:$0xff]  ;;  %v259_v55 = vld [vmem:[%s4644_s2 + $0x198] sm:$0xff]  ;;  %v258_v56 = vld [vmem:[%s4644_s2 + $0x190] sm:$0xff] }
  0x28   :  { %v261_v57 = vld [vmem:[%s4644_s2 + $0x1a8] sm:$0xff]  ;;  %v260_v58 = vld [vmem:[%s4644_s2 + $0x1a0] sm:$0xff]  ;;  %v263_v59 = vld [vmem:[%s4644_s2 + $0x1b8] sm:$0xff] }
  0x29   :  { %v262_v60 = vld [vmem:[%s4644_s2 + $0x1b0] sm:$0xff]  ;;  %v265_v61 = vld [vmem:[%s4644_s2 + $0x1c8] sm:$0xff]  ;;  %v264_v62 = vld [vmem:[%s4644_s2 + $0x1c0] sm:$0xff] }
  0x2a   :  { %336 = vperm.xlu1 %2818, %v229_v25   ;;  %v267_v63 = vld [vmem:[%s4644_s2 + $0x1d8] sm:$0xff]  ;;  %v266_v0 = vld [vmem:[%s4644_s2 + $0x1d0] sm:$0xff]  ;;  %v269_v1 = vld [vmem:[%s4644_s2 + $0x1e8] sm:$0xff] }
  0x2b   :  { %333 = vperm.xlu0 %2817, %v228_v26   ;;  %v268_v2 = vld [vmem:[%s4644_s2 + $0x1e0] sm:$0xff]  ;;  %v271_v4 = vld [vmem:[%s4644_s2 + $0x1f8] sm:$0xff]  ;;  %v270_v6 = vld [vmem:[%s4644_s2 + $0x1f0] sm:$0xff] }
  0x2c   :  { %v657_v8 = vld [vmem:[%s4643_s1 + $0x8] sm:$0xff]  ;;  %v656_v9 = vld [vmem:[%s4643_s1] sm:$0xff]  ;;  %v659_v12 = vld [vmem:[%s4643_s1 + $0x18] sm:$0xff] }
  0x2d   :  { %v658_v15 = vld [vmem:[%s4643_s1 + $0x10] sm:$0xff]  ;;  %v661_v18 = vld [vmem:[%s4643_s1 + $0x28] sm:$0xff]  ;;  %v660_v19 = vld [vmem:[%s4643_s1 + $0x20] sm:$0xff] }
  0x2e   :  { %342 = vperm.xlu1 %2818, %v231_v27   ;;  %v663_v22 = vld [vmem:[%s4643_s1 + $0x38] sm:$0xff]  ;;  %v662_v23 = vld [vmem:[%s4643_s1 + $0x30] sm:$0xff]  ;;  %v665_v26 = vld [vmem:[%s4643_s1 + $0x48] sm:$0xff] }
  0x2f   :  { %339 = vperm.xlu0 %2817, %v230_v28   ;;  %v664_v27 = vld [vmem:[%s4643_s1 + $0x40] sm:$0xff] }
  0x32   :  { %348 = vperm.xlu1 %2818, %v233_v29  }
  0x33   :  { %345 = vperm.xlu0 %2817, %v232_v30   ;;  %v667_v30 = vld [vmem:[%s4643_s1 + $0x58] sm:$0xff] }
  0x36   :  { %354 = vperm.xlu1 %2818, %v235_v31   ;;  %v666_v31 = vld [vmem:[%s4643_s1 + $0x50] sm:$0xff] }
  0x37   :  { %351 = vperm.xlu0 %2817, %v234_v32  }
  0x3a   :  { %360 = vperm.xlu1 %2818, %v237_v33  }
  0x3b   :  { %357 = vperm.xlu0 %2817, %v236_v34   ;;  %v669_v34 = vld [vmem:[%s4643_s1 + $0x68] sm:$0xff] }
  0x3e   :  { %366 = vperm.xlu1 %2818, %v239_v35   ;;  %v668_v35 = vld [vmem:[%s4643_s1 + $0x60] sm:$0xff] }
  0x3f   :  { %363 = vperm.xlu0 %2817, %v238_v36  }
  0x42   :  { %372 = vperm.xlu1 %2818, %v241_v37  }
  0x43   :  { %369 = vperm.xlu0 %2817, %v240_v38   ;;  %v671_v38 = vld [vmem:[%s4643_s1 + $0x78] sm:$0xff] }
  0x46   :  { %378 = vperm.xlu1 %2818, %v243_v39   ;;  %v670_v39 = vld [vmem:[%s4643_s1 + $0x70] sm:$0xff] }
  0x47   :  { %375 = vperm.xlu0 %2817, %v242_v40  }
  0x4a   :  { %384 = vperm.xlu1 %2818, %v245_v41  }
  0x4b   :  { %381 = vperm.xlu0 %2817, %v244_v42   ;;  %v673_v42 = vld [vmem:[%s4643_s1 + $0x88] sm:$0xff] }
  0x4e   :  { %390 = vperm.xlu1 %2818, %v247_v43   ;;  %v672_v43 = vld [vmem:[%s4643_s1 + $0x80] sm:$0xff] }
  0x4f   :  { %387 = vperm.xlu0 %2817, %v246_v44  }
  0x52   :  { %396 = vperm.xlu1 %2818, %v249_v45  }
  0x53   :  { %393 = vperm.xlu0 %2817, %v248_v46   ;;  %v675_v46 = vld [vmem:[%s4643_s1 + $0x98] sm:$0xff] }
  0x56   :  { %402 = vperm.xlu1 %2818, %v251_v47   ;;  %v674_v47 = vld [vmem:[%s4643_s1 + $0x90] sm:$0xff] }
  0x57   :  { %399 = vperm.xlu0 %2817, %v250_v48  }
  0x5a   :  { %408 = vperm.xlu1 %2818, %v253_v49  }
  0x5b   :  { %405 = vperm.xlu0 %2817, %v252_v50   ;;  %v677_v50 = vld [vmem:[%s4643_s1 + $0xa8] sm:$0xff] }
  0x5e   :  { %414 = vperm.xlu1 %2818, %v255_v51   ;;  %v676_v51 = vld [vmem:[%s4643_s1 + $0xa0] sm:$0xff] }
  0x5f   :  { %411 = vperm.xlu0 %2817, %v254_v52  }
  0x62   :  { %420 = vperm.xlu1 %2818, %v257_v53  }
  0x63   :  { %417 = vperm.xlu0 %2817, %v256_v54   ;;  %v679_v54 = vld [vmem:[%s4643_s1 + $0xb8] sm:$0xff] }
  0x66   :  { %426 = vperm.xlu1 %2818, %v259_v55   ;;  %v678_v55 = vld [vmem:[%s4643_s1 + $0xb0] sm:$0xff] }
  0x67   :  { %423 = vperm.xlu0 %2817, %v258_v56  }
  0x6a   :  { %432 = vperm.xlu1 %2818, %v261_v57  }
  0x6b   :  { %429 = vperm.xlu0 %2817, %v260_v58   ;;  %v681_v58 = vld [vmem:[%s4643_s1 + $0xc8] sm:$0xff] }
  0x6e   :  { %438 = vperm.xlu1 %2818, %v263_v59   ;;  %v680_v59 = vld [vmem:[%s4643_s1 + $0xc0] sm:$0xff] }
  0x6f   :  { %435 = vperm.xlu0 %2817, %v262_v60  }
  0x72   :  { %444 = vperm.xlu1 %2818, %v265_v61  }
  0x73   :  { %441 = vperm.xlu0 %2817, %v264_v62   ;;  %v683_v62 = vld [vmem:[%s4643_s1 + $0xd8] sm:$0xff] }
  0x76   :  { %450 = vperm.xlu1 %2818, %v267_v63   ;;  %v682_v63 = vld [vmem:[%s4643_s1 + $0xd0] sm:$0xff] }
  0x77   :  { %447 = vperm.xlu0 %2817, %v266_v0  }
  0x7a   :  { %456 = vperm.xlu1 %2818, %v269_v1  }
  0x7b   :  { %453 = vperm.xlu0 %2817, %v268_v2   ;;  %v685_v2 = vld [vmem:[%s4643_s1 + $0xe8] sm:$0xff] }
  0x7e   :  { %462 = vperm.xlu1 %2818, %v271_v4   ;;  %v684_v4 = vld [vmem:[%s4643_s1 + $0xe0] sm:$0xff] }
  0x7f   :  { %459 = vperm.xlu0 %2817, %v270_v6  }
  0x81   :  { %v3360_v10 = vpop.permute.xlu1 %279 }
  0x82   :  { %v274_v11 = vpop.permute.xlu0 %273  ;;  %724 = vperm.xlu1 %2818, %v657_v8   ;;  %v687_v8 = vld [vmem:[%s4643_s1 + $0xf8] sm:$0xff]  ;;  %vm466_vm7 = vcmp.eq.s32.totalorder %v3360_v10, %v3352_v7 }
  0x83   :  { %vm464_vm2 = vcmp.eq.s32.totalorder %v274_v11, %v3352_v7  ;;  %721 = vperm.xlu0 %2817, %v656_v9   ;;  %v686_v9 = vld [vmem:[%s4643_s1 + $0xf0] sm:$0xff]  ;;  %v2356_v10 = vsel %vm466_vm7, 1.0, %v3092_v13 }
  0x84   :  { %v2354_v14 = vsel %vm464_vm2, 1.0, %v3092_v13 }
  0x85   :  { %v3370_v16 = vpop.permute.xlu1 %282  ;;  %2645 = vmatprep.mubr.msk.f32.mxu0 %vm1426_vm1, %v2354_v14  ;;  %v689_v14 = vld [vmem:[%s4643_s1 + $0x108] sm:$0xff] }
  0x86   :  { %v3373_v17 = vpop.permute.xlu0 %276  ;;  %730 = vperm.xlu1 %2818, %v659_v12   ;;  %vm467_vm9 = vcmp.eq.s32.totalorder %v3370_v16, %v3352_v7 }
  0x87   :  { %727 = vperm.xlu0 %2817, %v658_v15   ;;  %v688_v15 = vld [vmem:[%s4643_s1 + $0x100] sm:$0xff]  ;;  %vm465_vm5 = vcmp.eq.s32.totalorder %v3373_v17, %v3352_v7  ;;  %v705_v17 = vld [vmem:[%s4643_s1 + $0x188] sm:$0xff]  ;;  %v2357_v16 = vsel %vm467_vm9, 1.0, %v3092_v13 }
  0x89   :  { %v3381_v20 = vpop.permute.xlu1 %288 }
  0x8a   :  { %v3383_v21 = vpop.permute.xlu0 %285  ;;  %736 = vperm.xlu1 %2818, %v661_v18   ;;  %vm469_vm13 = vcmp.eq.s32.totalorder %v3381_v20, %v3352_v7 }
  0x8b   :  { %733 = vperm.xlu0 %2817, %v660_v19   ;;  %vm468_vm11 = vcmp.eq.s32.totalorder %v3383_v21, %v3352_v7  ;;  %v706_v21 = vld [vmem:[%s4643_s1 + $0x190] sm:$0xff] }
  0x8d   :  { %v3391_v24 = vpop.permute.xlu1 %294 }
  0x8e   :  { %v3393_v25 = vpop.permute.xlu0 %291  ;;  %742 = vperm.xlu1 %2818, %v663_v22   ;;  %v691_v22 = vld [vmem:[%s4643_s1 + $0x118] sm:$0xff]  ;;  %vm471_vm2 = vcmp.eq.s32.totalorder %v3391_v24, %v3352_v7 }
  0x8f   :  { %739 = vperm.xlu0 %2817, %v662_v23   ;;  %v690_v23 = vld [vmem:[%s4643_s1 + $0x110] sm:$0xff]  ;;  %vm470_vm15 = vcmp.eq.s32.totalorder %v3393_v25, %v3352_v7  ;;  %v708_v25 = vld [vmem:[%s4643_s1 + $0x1a0] sm:$0xff] }
  0x91   :  { %v3401_v28 = vpop.permute.xlu1 %300 }
  0x92   :  { %v3403_v29 = vpop.permute.xlu0 %297  ;;  %748 = vperm.xlu1 %2818, %v665_v26  }
  0x93   :  { %745 = vperm.xlu0 %2817, %v664_v27  }
  0x95   :  { %v3411_v32 = vpop.permute.xlu1 %306 }
  0x96   :  { %v3413_v33 = vpop.permute.xlu0 %303  ;;  %754 = vperm.xlu1 %2818, %v667_v30   ;;  %v693_v30 = vld [vmem:[%s4643_s1 + $0x128] sm:$0xff] }
  0x97   :  { %751 = vperm.xlu0 %2817, %v666_v31   ;;  %v692_v31 = vld [vmem:[%s4643_s1 + $0x120] sm:$0xff] }
  0x99   :  { %v3421_v36 = vpop.permute.xlu1 %312 }
  0x9a   :  { %v3423_v37 = vpop.permute.xlu0 %309  ;;  %760 = vperm.xlu1 %2818, %v669_v34  }
  0x9b   :  { %757 = vperm.xlu0 %2817, %v668_v35  }
  0x9d   :  { %v3431_v40 = vpop.permute.xlu1 %318 }
  0x9e   :  { %v3433_v41 = vpop.permute.xlu0 %315  ;;  %766 = vperm.xlu1 %2818, %v671_v38   ;;  %v695_v38 = vld [vmem:[%s4643_s1 + $0x138] sm:$0xff] }
  0x9f   :  { %763 = vperm.xlu0 %2817, %v670_v39   ;;  %v694_v39 = vld [vmem:[%s4643_s1 + $0x130] sm:$0xff] }
  0xa1   :  { %v3441_v44 = vpop.permute.xlu1 %324 }
  0xa2   :  { %v3443_v45 = vpop.permute.xlu0 %321  ;;  %772 = vperm.xlu1 %2818, %v673_v42  }
  0xa3   :  { %769 = vperm.xlu0 %2817, %v672_v43  }
  0xa5   :  { %v3451_v48 = vpop.permute.xlu1 %330 }
  0xa6   :  { %v3453_v49 = vpop.permute.xlu0 %327  ;;  %778 = vperm.xlu1 %2818, %v675_v46   ;;  %v697_v46 = vld [vmem:[%s4643_s1 + $0x148] sm:$0xff] }
  0xa7   :  { %775 = vperm.xlu0 %2817, %v674_v47   ;;  %v696_v47 = vld [vmem:[%s4643_s1 + $0x140] sm:$0xff] }
  0xa9   :  { %v3461_v52 = vpop.permute.xlu1 %336 }
  0xaa   :  { %v3463_v53 = vpop.permute.xlu0 %333  ;;  %784 = vperm.xlu1 %2818, %v677_v50  }
  0xab   :  { %781 = vperm.xlu0 %2817, %v676_v51  }
  0xad   :  { %v3471_v56 = vpop.permute.xlu1 %342 }
  0xae   :  { %v3473_v57 = vpop.permute.xlu0 %339  ;;  %790 = vperm.xlu1 %2818, %v679_v54   ;;  %v699_v54 = vld [vmem:[%s4643_s1 + $0x158] sm:$0xff] }
  0xaf   :  { %787 = vperm.xlu0 %2817, %v678_v55   ;;  %v698_v55 = vld [vmem:[%s4643_s1 + $0x150] sm:$0xff] }
  0xb1   :  { %v3481_v60 = vpop.permute.xlu1 %348 }
  0xb2   :  { %v3483_v61 = vpop.permute.xlu0 %345  ;;  %796 = vperm.xlu1 %2818, %v681_v58  }
  0xb3   :  { %793 = vperm.xlu0 %2817, %v680_v59  }
  0xb5   :  { %v3491_v0 = vpop.permute.xlu1 %354 }
  0xb6   :  { %v3493_v1 = vpop.permute.xlu0 %351  ;;  %802 = vperm.xlu1 %2818, %v683_v62   ;;  %v701_v62 = vld [vmem:[%s4643_s1 + $0x168] sm:$0xff] }
  0xb7   :  { %799 = vperm.xlu0 %2817, %v682_v63  }
  0xb9   :  { %v3501_v5 = vpop.permute.xlu1 %360 }
  0xba   :  { %v3503_v6 = vpop.permute.xlu0 %357  ;;  %808 = vperm.xlu1 %2818, %v685_v2  }
  0xbb   :  { %805 = vperm.xlu0 %2817, %v684_v4   ;;  %v700_v4 = vld [vmem:[%s4643_s1 + $0x160] sm:$0xff] }
  0xbd   :  { %v3511_v11 = vpop.permute.xlu1 %366 }
  0xbe   :  { %v3513_v12 = vpop.permute.xlu0 %363  ;;  %814 = vperm.xlu1 %2818, %v687_v8  }
  0xbf   :  { %811 = vperm.xlu0 %2817, %v686_v9  }
  0xc1   :  { %v3521_v18 = vpop.permute.xlu1 %372 }
  0xc2   :  { %v3523_v19 = vpop.permute.xlu0 %369  ;;  %820 = vperm.xlu1 %2818, %v689_v14  }
  0xc3   :  { %817 = vperm.xlu0 %2817, %v688_v15  }
  0xc5   :  { %v3531_v26 = vpop.permute.xlu1 %378 }
  0xc6   :  { %v3533_v27 = vpop.permute.xlu0 %375  ;;  %826 = vperm.xlu1 %2818, %v691_v22  }
  0xc7   :  { %823 = vperm.xlu0 %2817, %v690_v23  }
  0xc9   :  { %v3541_v34 = vpop.permute.xlu1 %384 }
  0xca   :  { %v3543_v35 = vpop.permute.xlu0 %381  ;;  %832 = vperm.xlu1 %2818, %v693_v30   ;;  %v703_v30 = vld [vmem:[%s4643_s1 + $0x178] sm:$0xff] }
  0xcb   :  { %829 = vperm.xlu0 %2817, %v692_v31   ;;  %v702_v31 = vld [vmem:[%s4643_s1 + $0x170] sm:$0xff] }
  0xcd   :  { %v3551_v42 = vpop.permute.xlu1 %390 }
  0xce   :  { %v3553_v43 = vpop.permute.xlu0 %387  ;;  %838 = vperm.xlu1 %2818, %v695_v38  }
  0xcf   :  { %835 = vperm.xlu0 %2817, %v694_v39  }
  0xd1   :  { %v3561_v50 = vpop.permute.xlu1 %396 }
  0xd2   :  { %v3563_v51 = vpop.permute.xlu0 %393  ;;  %844 = vperm.xlu1 %2818, %v697_v46   ;;  %v2355_v46 = vsel %vm465_vm5, 1.0, %v3092_v13 }
  0xd3   :  { %841 = vperm.xlu0 %2817, %v696_v47  }
  0xd5   :  { %v403_v58 = vpop.permute.xlu1 %402 }
  0xd6   :  { %v400_v59 = vpop.permute.xlu0 %399  ;;  %850 = vperm.xlu1 %2818, %v699_v54   ;;  %vm507_vm6 = vcmp.eq.s32.totalorder %v403_v58, %v3352_v7  ;;  %v704_v54 = vld [vmem:[%s4643_s1 + $0x180] sm:$0xff] }
  0xd7   :  { %vm506_vm4 = vcmp.eq.s32.totalorder %v400_v59, %v3352_v7  ;;  %847 = vperm.xlu0 %2817, %v698_v55   ;;  %v2397_v47 = vsel %vm507_vm6, 1.0, %v3092_v13  ;;  %vm473_vm6 = vcmp.eq.s32.totalorder %v3401_v28, %v3352_v7 }
  0xd8   :  { %v2396_v63 = vsel %vm506_vm4, 1.0, %v3092_v13  ;;  %v2640_v2 = vpop.f32.mrb[0].mxu1  ;;  %vm472_vm4 = vcmp.eq.s32.totalorder %v3403_v29, %v3352_v7  ;;  %v710_v29 = vld [vmem:[%s4643_s1 + $0x1b0] sm:$0xff] }
  0xd9   :  { %v201_v8 = vsel %vm199_vm3, 1.0, %v2640_v2  ;;  %v188_v9 = vpop.f32.mrb[1].mxu1  ;;  %2708 = vmatprep.mubr.msk.f32.mxu1 %vm1426_vm1, %v2396_v63  ;;  %v409_v14 = vpop.permute.xlu1 %408  ;;  %v707_v63 = vld [vmem:[%s4643_s1 + $0x198] sm:$0xff]  ;;  %v2358_v2 = vsel %vm468_vm11, 1.0, %v3092_v13 }
  0xda   :  { %v200_v15 = vsel %vm199_vm3, 1.0, %v188_v9  ;;  %v406_v22 = vpop.permute.xlu0 %405  ;;  %856 = vperm.xlu1 %2818, %v701_v62   ;;  %vm509_vm10 = vcmp.eq.s32.totalorder %v409_v14, %v3352_v7  ;;  %v2359_v9 = vsel %vm469_vm13, 1.0, %v3092_v13 }
  0xdb   :  { %v2741_v23 = vpack.c.bf16 %v201_v8, %v200_v15  ;;  %853 = vperm.xlu0 %2817, %v700_v4   ;;  %vm508_vm8 = vcmp.eq.s32.totalorder %v406_v22, %v3352_v7  ;;  %v2399_v62 = vsel %vm509_vm10, 1.0, %v3092_v13  ;;  %v709_v15 = vld [vmem:[%s4643_s1 + $0x1a8] sm:$0xff]  ;;  %v2360_v22 = vsel %vm470_vm15, 1.0, %v3092_v13 }
  0xdc   :  { %v2398_v55 = vsel %vm508_vm8, 1.0, %v3092_v13  ;;  %vm474_vm8 = vcmp.eq.s32.totalorder %v3413_v33, %v3352_v7  ;;  %vm475_vm10 = vcmp.eq.s32.totalorder %v3411_v32, %v3352_v7 }
  0xdd   :  { %2742 = vmatprep.subr.bf16.mxu0 %v2741_v23  ;;  %2809 = vmatprep.subr.bf16.mxu1 %v2741_v23  ;;  %v415_v38 = vpop.permute.xlu1 %414  ;;  %v2364_v28 = vsel %vm474_vm8, 1.0, %v3092_v13 }
  0xde   :  { %2744 = vmatpush3.bf16.msra.mxu0 %v2741_v23  ;;  %2810 = vmatpush3.bf16.msra.mxu1 %v2741_v23  ;;  %v412_v39 = vpop.permute.xlu0 %411  ;;  %vm511_vm14 = vcmp.eq.s32.totalorder %v415_v38, %v3352_v7  ;;  %v2361_v38 = vsel %vm471_vm2, 1.0, %v3092_v13 }
  0xdf   :  { %862 = vperm.xlu1 %2818, %v703_v30   ;;  %859 = vperm.xlu0 %2817, %v702_v31   ;;  %vm510_vm12 = vcmp.eq.s32.totalorder %v412_v39, %v3352_v7  ;;  %v2401_v14 = vsel %vm511_vm14, 1.0, %v3092_v13  ;;  %v711_v31 = vld [vmem:[%s4643_s1 + $0x1b8] sm:$0xff]  ;;  %vm477_vm14 = vcmp.eq.s32.totalorder %v3421_v36, %v3352_v7 }
  0xe0   :  { %v2400_v4 = vsel %vm510_vm12, 1.0, %v3092_v13  ;;  %vm476_vm12 = vcmp.eq.s32.totalorder %v3423_v37, %v3352_v7 }
  0xe1   :  { %2646 = vmatmul.mubr.msk.f32.vlgmr.msra.gmra.mrb[2].mxu0 %vm1426_vm1, %v2355_v46  ;;  %2709 = vmatmul.mubr.msk.f32.vlgmr.msra.gmra.mrb[2].mxu1 %vm1426_vm1, %v2397_v47  ;;  %v421_v58 = vpop.permute.xlu1 %420  ;;  %v976_v46 = vld [vmem:[%s4645_s3] sm:$0xff]  ;;  %v2366_v32 = vsel %vm476_vm12, 1.0, %v3092_v13 }
  0xe2   :  { %2648 = vmatprep.mubr.msk.f32.mxu0 %vm1426_vm1, %v2356_v10  ;;  %2711 = vmatprep.mubr.msk.f32.mxu1 %vm1426_vm1, %v2398_v55  ;;  %v418_v59 = vpop.permute.xlu0 %417  ;;  %vm513_vm3 = vcmp.eq.s32.totalorder %v421_v58, %v3352_v7  ;;  %v992_v47 = vld [vmem:[%s4645_s3 + $0x80] sm:$0xff] }
  0xe3   :  { %868 = vperm.xlu1 %2818, %v705_v17   ;;  %865 = vperm.xlu0 %2817, %v704_v54   ;;  %vm512_vm0 = vcmp.eq.s32.totalorder %v418_v59, %v3352_v7  ;;  %v2403_v39 = vsel %vm513_vm3, 1.0, %v3092_v13  ;;  %v2362_v17 = vsel %vm472_vm4, 1.0, %v3092_v13  ;;  %v2819_v58 = vpack.i.bf16 %v976_v46, %v992_v47  ;;  %v712_v59 = vld [vmem:[%s4643_s1 + $0x1c0] sm:$0xff]  ;;  %v982_v46 = vld [vmem:[%s4645_s3 + $0x30] sm:$0xff] }
  0xe4   :  { %v2402_v23 = vsel %vm512_vm0, 1.0, %v3092_v13  ;;  %vm478_vm0 = vcmp.eq.s32.totalorder %v3433_v41, %v3352_v7  ;;  %v2367_v47 = vsel %vm477_vm14, 1.0, %v3092_v13  ;;  %vm479_vm3 = vcmp.eq.s32.totalorder %v3431_v40, %v3352_v7 }
  0xe5   :  { %2649 = vmatmul.mubr.msk.f32.gmra.mrb[4].mxu0 %vm1426_vm1, %v2357_v16  ;;  %2712 = vmatmul.mubr.msk.f32.gmra.mrb[4].mxu1 %vm1426_vm1, %v2399_v62  ;;  %v427_v8 = vpop.permute.xlu1 %426  ;;  %v978_v16 = vld [vmem:[%s4645_s3 + $0x10] sm:$0xff]  ;;  %v2363_v62 = vsel %vm473_vm6, 1.0, %v3092_v13  ;;  %v2368_v36 = vsel %vm478_vm0, 1.0, %v3092_v13 }
  0xe6   :  { %2651 = vmatprep.mubr.msk.f32.mxu0 %vm1426_vm1, %v2358_v2  ;;  %2714 = vmatprep.mubr.msk.f32.mxu1 %vm1426_vm1, %v2400_v4  ;;  %v424_v20 = vpop.permute.xlu0 %423  ;;  %vm515_vm7 = vcmp.eq.s32.totalorder %v427_v8, %v3352_v7  ;;  %v977_v2 = vld [vmem:[%s4645_s3 + $0x8] sm:$0xff] }
  0xe7   :  { %874 = vperm.xlu1 %2818, %v707_v63   ;;  %871 = vperm.xlu0 %2817, %v706_v21   ;;  %vm514_vm5 = vcmp.eq.s32.totalorder %v424_v20, %v3352_v7  ;;  %v2405_v63 = vsel %vm515_vm7, 1.0, %v3092_v13  ;;  %v994_v21 = vld [vmem:[%s4645_s3 + $0x90] sm:$0xff]  ;;  %v993_v4 = vld [vmem:[%s4645_s3 + $0x88] sm:$0xff]  ;;  %vm481_vm7 = vcmp.eq.s32.totalorder %v3441_v44, %v3352_v7 }
  0xe8   :  { %v2404_v54 = vsel %vm514_vm5, 1.0, %v3092_v13  ;;  %vm480_vm5 = vcmp.eq.s32.totalorder %v3443_v45, %v3352_v7 }
  0xe9   :  { %2652 = vmatmul.mubr.msk.f32.gmra.mrb[6].mxu0 %vm1426_vm1, %v2359_v9  ;;  %2715 = vmatmul.mubr.msk.f32.gmra.mrb[6].mxu1 %vm1426_vm1, %v2401_v14  ;;  %v433_v30 = vpop.permute.xlu1 %432  ;;  %v2829_v9 = vpack.i.bf16 %v978_v16, %v994_v21  ;;  %v2824_v14 = vpack.i.bf16 %v977_v2, %v993_v4  ;;  %v2369_v21 = vsel %vm479_vm3, 1.0, %v3092_v13  ;;  %v1000_v4 = vld [vmem:[%s4645_s3 + $0xc0] sm:$0xff]  ;;  %v2370_v40 = vsel %vm480_vm5, 1.0, %v3092_v13 }
  0xea   :  { %2654 = vmatprep.mubr.msk.f32.mxu0 %vm1426_vm1, %v2360_v22  ;;  %2717 = vmatprep.mubr.msk.f32.mxu1 %vm1426_vm1, %v2402_v23  ;;  %v430_v24 = vpop.permute.xlu0 %429  ;;  %vm517_vm11 = vcmp.eq.s32.totalorder %v433_v30, %v3352_v7  ;;  %v996_v23 = vld [vmem:[%s4645_s3 + $0xa0] sm:$0xff]  ;;  %vm487_vm3 = vcmp.eq.s32.totalorder %v3471_v56, %v3352_v7  ;;  %vm489_vm5 = vcmp.eq.s32.totalorder %v3481_v60, %v3352_v7  ;;  %v1010_v60 = vld [vmem:[%s4645_s3 + $0x110] sm:$0xff] }
  0xeb   :  { %880 = vperm.xlu1 %2818, %v709_v15   ;;  %877 = vperm.xlu0 %2817, %v708_v25   ;;  %vm516_vm9 = vcmp.eq.s32.totalorder %v430_v24, %v3352_v7  ;;  %v980_v15 = vld [vmem:[%s4645_s3 + $0x20] sm:$0xff]  ;;  %v2365_v25 = vsel %vm475_vm10, 1.0, %v3092_v13  ;;  %v2407_v22 = vsel %vm517_vm11, 1.0, %v3092_v13  ;;  %v979_v24 = vld [vmem:[%s4645_s3 + $0x18] sm:$0xff]  ;;  %vm483_vm11 = vcmp.eq.s32.totalorder %v3451_v48, %v3352_v7 }
  0xec   :  { %v2406_v8 = vsel %vm516_vm9, 1.0, %v3092_v13  ;;  %vm482_vm9 = vcmp.eq.s32.totalorder %v3453_v49, %v3352_v7  ;;  %v1008_v56 = vld [vmem:[%s4645_s3 + $0x100] sm:$0xff] }
  0xed   :  { %2655 = vmatmul.mubr.msk.f32.gmra.mrb[8].mxu0 %vm1426_vm1, %v2361_v38  ;;  %2718 = vmatmul.mubr.msk.f32.gmra.mrb[8].mxu1 %vm1426_vm1, %v2403_v39  ;;  %v439_v10 = vpop.permute.xlu1 %438  ;;  %v2839_v39 = vpack.i.bf16 %v980_v15, %v996_v23  ;;  %v986_v15 = vld [vmem:[%s4645_s3 + $0x50] sm:$0xff]  ;;  %v2372_v44 = vsel %vm482_vm9, 1.0, %v3092_v13  ;;  %vm493_vm9 = vcmp.eq.s32.totalorder %v3501_v5, %v3352_v7 }
  0xee   :  { %2657 = vmatprep.mubr.msk.f32.mxu0 %vm1426_vm1, %v2362_v17  ;;  %2720 = vmatprep.mubr.msk.f32.mxu1 %vm1426_vm1, %v2404_v54  ;;  %v436_v55 = vpop.permute.xlu0 %435  ;;  %vm519_vm15 = vcmp.eq.s32.totalorder %v439_v10, %v3352_v7  ;;  %v998_v54 = vld [vmem:[%s4645_s3 + $0xb0] sm:$0xff] }
  0xef   :  { %886 = vperm.xlu1 %2818, %v711_v31   ;;  %883 = vperm.xlu0 %2817, %v710_v29   ;;  %vm518_vm13 = vcmp.eq.s32.totalorder %v436_v55, %v3352_v7  ;;  %v995_v31 = vld [vmem:[%s4645_s3 + $0x98] sm:$0xff]  ;;  %v2409_v17 = vsel %vm519_vm15, 1.0, %v3092_v13  ;;  %v981_v55 = vld [vmem:[%s4645_s3 + $0x28] sm:$0xff]  ;;  %v2849_v16 = vpack.i.bf16 %v982_v46, %v998_v54  ;;  %v1002_v23 = vld [vmem:[%s4645_s3 + $0xd0] sm:$0xff]  ;;  %vm485_vm15 = vcmp.eq.s32.totalorder %v3461_v52, %v3352_v7 }
  0xf0   :  { %v2408_v30 = vsel %vm518_vm13, 1.0, %v3092_v13  ;;  %v2834_v29 = vpack.i.bf16 %v979_v24, %v995_v31  ;;  %v985_v24 = vld [vmem:[%s4645_s3 + $0x48] sm:$0xff]  ;;  %vm484_vm13 = vcmp.eq.s32.totalorder %v3463_v53, %v3352_v7  ;;  %v1003_v54 = vld [vmem:[%s4645_s3 + $0xd8] sm:$0xff]  ;;  %v1014_v5 = vld [vmem:[%s4645_s3 + $0x130] sm:$0xff] }
  0xf1   :  { %2658 = vmatmul.mubr.msk.f32.gmra.mrb[10].mxu0 %vm1426_vm1, %v2363_v62  ;;  %2721 = vmatmul.mubr.msk.f32.gmra.mrb[10].mxu1 %vm1426_vm1, %v2405_v63  ;;  %v445_v20 = vpop.permute.xlu1 %444  ;;  %v984_v63 = vld [vmem:[%s4645_s3 + $0x40] sm:$0xff]  ;;  %v1001_v31 = vld [vmem:[%s4645_s3 + $0xc8] sm:$0xff]  ;;  %v2374_v48 = vsel %vm484_vm13, 1.0, %v3092_v13  ;;  %vm497_vm13 = vcmp.eq.s32.totalorder %v3521_v18, %v3352_v7 }
  0xf2   :  { %2660 = vmatprep.mubr.msk.f32.mxu0 %vm1426_vm1, %v2364_v28  ;;  %2723 = vmatprep.mubr.msk.f32.mxu1 %vm1426_vm1, %v2406_v8  ;;  %v442_v33 = vpop.permute.xlu0 %441  ;;  %vm521_vm4 = vcmp.eq.s32.totalorder %v445_v20, %v3352_v7  ;;  %v983_v28 = vld [vmem:[%s4645_s3 + $0x38] sm:$0xff]  ;;  %v1017_v18 = vld [vmem:[%s4645_s3 + $0x148] sm:$0xff] }
  0xf3   :  { %2820 = vperm.xlu1 %2818, %v2819_v58   ;;  %889 = vperm.xlu0 %2817, %v712_v59   ;;  %vm520_vm2 = vcmp.eq.s32.totalorder %v442_v33, %v3352_v7  ;;  %v997_v58 = vld [vmem:[%s4645_s3 + $0xa8] sm:$0xff]  ;;  %v2411_v2 = vsel %vm521_vm4, 1.0, %v3092_v13  ;;  %v999_v8 = vld [vmem:[%s4645_s3 + $0xb8] sm:$0xff]  ;;  %vm488_vm4 = vcmp.eq.s32.totalorder %v3483_v61, %v3352_v7 }
  0xf4   :  { %v2410_v10 = vsel %vm520_vm2, 1.0, %v3092_v13  ;;  %v2844_v62 = vpack.i.bf16 %v981_v55, %v997_v58  ;;  %vm486_vm2 = vcmp.eq.s32.totalorder %v3473_v57, %v3352_v7  ;;  %v991_v61 = vld [vmem:[%s4645_s3 + $0x78] sm:$0xff] }
  0xf5   :  { %2661 = vmatmul.mubr.msk.f32.gmra.mrb[12].mxu0 %vm1426_vm1, %v2365_v25  ;;  %2724 = vmatmul.mubr.msk.f32.gmra.mrb[12].mxu1 %vm1426_vm1, %v2407_v22  ;;  %v451_v38 = vpop.permute.xlu1 %450  ;;  %v2371_v25 = vsel %vm481_vm7, 1.0, %v3092_v13  ;;  %v2376_v52 = vsel %vm486_vm2, 1.0, %v3092_v13  ;;  %vm491_vm7 = vcmp.eq.s32.totalorder %v3491_v0, %v3352_v7  ;;  %v1012_v0 = vld [vmem:[%s4645_s3 + $0x120] sm:$0xff]  ;;  %vm501_vm2 = vcmp.eq.s32.totalorder %v3541_v34, %v3352_v7  ;;  %v714_v34 = vld [vmem:[%s4643_s1 + $0x1d0] sm:$0xff] }
  0xf6   :  { %2663 = vmatprep.mubr.msk.f32.mxu0 %vm1426_vm1, %v2366_v32  ;;  %2726 = vmatprep.mubr.msk.f32.mxu1 %vm1426_vm1, %v2408_v30  ;;  %v448_v37 = vpop.permute.xlu0 %447  ;;  %vm523_vm8 = vcmp.eq.s32.totalorder %v451_v38, %v3352_v7  ;;  %v2869_v38 = vpack.i.bf16 %v986_v15, %v1002_v23  ;;  %v1025_v23 = vld [vmem:[%s4645_s3 + $0x188] sm:$0xff] }
  0xf7   :  { %2830 = vperm.xlu1 %2818, %v2829_v9   ;;  %2825 = vperm.xlu0 %2817, %v2824_v14   ;;  %vm522_vm6 = vcmp.eq.s32.totalorder %v448_v37, %v3352_v7  ;;  %v2859_v9 = vpack.i.bf16 %v984_v63, %v1000_v4  ;;  %v2854_v14 = vpack.i.bf16 %v983_v28, %v999_v8  ;;  %v2413_v22 = vsel %vm523_vm8, 1.0, %v3092_v13  ;;  %v1005_v63 = vld [vmem:[%s4645_s3 + $0xe8] sm:$0xff] }
  0xf8   :  { %v2412_v20 = vsel %vm522_vm6, 1.0, %v3092_v13  ;;  %v2864_v37 = vpack.i.bf16 %v985_v24, %v1001_v31  ;;  %v2377_v8 = vsel %vm487_vm3, 1.0, %v3092_v13  ;;  %vm490_vm6 = vcmp.eq.s32.totalorder %v3493_v1, %v3352_v7  ;;  %v1009_v1 = vld [vmem:[%s4645_s3 + $0x108] sm:$0xff] }
  0xf9   :  { %2664 = vmatmul.mubr.msk.f32.gmra.mrb[14].mxu0 %vm1426_vm1, %v2367_v47  ;;  %2727 = vmatmul.mubr.msk.f32.gmra.mrb[14].mxu1 %vm1426_vm1, %v2409_v17  ;;  %v457_v59 = vpop.permute.xlu1 %456  ;;  %v1004_v47 = vld [vmem:[%s4645_s3 + $0xe0] sm:$0xff]  ;;  %v987_v17 = vld [vmem:[%s4645_s3 + $0x58] sm:$0xff]  ;;  %v2380_v24 = vsel %vm490_vm6, 1.0, %v3092_v13  ;;  %vm492_vm8 = vcmp.eq.s32.totalorder %v3503_v6, %v3352_v7  ;;  %vm502_vm3 = vcmp.eq.s32.totalorder %v3553_v43, %v3352_v7  ;;  %vm505_vm6 = vcmp.eq.s32.totalorder %v3561_v50, %v3352_v7  ;;  %v1021_v50 = vld [vmem:[%s4645_s3 + $0x168] sm:$0xff] }
  0xfa   :  { %2666 = vmatprep.mubr.msk.f32.mxu0 %vm1426_vm1, %v2368_v36  ;;  %2729 = vmatprep.mubr.msk.f32.mxu1 %vm1426_vm1, %v2410_v10  ;;  %v454_v41 = vpop.permute.xlu0 %453  ;;  %vm525_vm12 = vcmp.eq.s32.totalorder %v457_v59, %v3352_v7  ;;  %v2874_v10 = vpack.i.bf16 %v987_v17, %v1003_v54  ;;  %v990_v59 = vld [vmem:[%s4645_s3 + $0x70] sm:$0xff]  ;;  %v1011_v6 = vld [vmem:[%s4645_s3 + $0x118] sm:$0xff] }
  0xfb   :  { %2840 = vperm.xlu1 %2818, %v2839_v39   ;;  %2835 = vperm.xlu0 %2817, %v2834_v29   ;;  %vm524_vm10 = vcmp.eq.s32.totalorder %v454_v41, %v3352_v7  ;;  %v988_v39 = vld [vmem:[%s4645_s3 + $0x60] sm:$0xff]  ;;  %v2373_v29 = vsel %vm483_vm11, 1.0, %v3092_v13  ;;  %v2415_v46 = vsel %vm525_vm12, 1.0, %v3092_v13  ;;  %v2375_v41 = vsel %vm485_vm15, 1.0, %v3092_v13  ;;  %v1035_v43 = vld [vmem:[%s4645_s3 + $0x1d8] sm:$0xff] }
  0xfc   :  { %v2414_v32 = vsel %vm524_vm10, 1.0, %v3092_v13  ;;  %v2879_v36 = vpack.i.bf16 %v988_v39, %v1004_v47  ;;  %v1028_v39 = vld [vmem:[%s4645_s3 + $0x1a0] sm:$0xff]  ;;  %vm494_vm10 = vcmp.eq.s32.totalorder %v3513_v12, %v3352_v7  ;;  %v1013_v12 = vld [vmem:[%s4645_s3 + $0x128] sm:$0xff]  ;;  %vm495_vm11 = vcmp.eq.s32.totalorder %v3511_v11, %v3352_v7 }
  0xfd   :  { %2667 = vmatmul.mubr.msk.f32.gmra.mrb[16].mxu0 %vm1426_vm1, %v2369_v21  ;;  %2730 = vmatmul.mubr.msk.f32.gmra.mrb[16].mxu1 %vm1426_vm1, %v2411_v2  ;;  %v463_v33 = vpop.permute.xlu1 %462  ;;  %v2919_v54 = vpack.i.bf16 %v1012_v0, %v1028_v39  ;;  %vm496_vm12 = vcmp.eq.s32.totalorder %v3523_v19, %v3352_v7  ;;  %v1016_v11 = vld [vmem:[%s4645_s3 + $0x140] sm:$0xff]  ;;  %v1015_v19 = vld [vmem:[%s4645_s3 + $0x138] sm:$0xff]  ;;  %vm499_vm15 = vcmp.eq.s32.totalorder %v3531_v26, %v3352_v7  ;;  %v713_v26 = vld [vmem:[%s4643_s1 + $0x1c8] sm:$0xff] }
  0xfe   :  { %2669 = vmatprep.mubr.msk.f32.mxu0 %vm1426_vm1, %v2370_v40  ;;  %2732 = vmatprep.mubr.msk.f32.mxu1 %vm1426_vm1, %v2412_v20  ;;  %v460_v45 = vpop.permute.xlu0 %459  ;;  %vm527_vm0 = vcmp.eq.s32.totalorder %v463_v33, %v3352_v7  ;;  %v1024_v40 = vld [vmem:[%s4645_s3 + $0x180] sm:$0xff]  ;;  %v1007_v20 = vld [vmem:[%s4645_s3 + $0xf8] sm:$0xff]  ;;  %v2378_v33 = vsel %vm488_vm4, 1.0, %v3092_v13  ;;  %vm503_vm4 = vcmp.eq.s32.totalorder %v3551_v42, %v3352_v7 }
  0xff   :  { %2850 = vperm.xlu1 %2818, %v2849_v16   ;;  %2845 = vperm.xlu0 %2817, %v2844_v62   ;;  %vm526_vm14 = vcmp.eq.s32.totalorder %v460_v45, %v3352_v7  ;;  %v2417_v57 = vsel %vm527_vm0, 1.0, %v3092_v13  ;;  %v1006_v16 = vld [vmem:[%s4645_s3 + $0xf0] sm:$0xff]  ;;  %v989_v62 = vld [vmem:[%s4645_s3 + $0x68] sm:$0xff]  ;;  %v2894_v15 = vpack.i.bf16 %v991_v61, %v1007_v20  ;;  %v2387_v20 = vsel %vm497_vm13, 1.0, %v3092_v13  ;;  %v1019_v0 = vld [vmem:[%s4645_s3 + $0x158] sm:$0xff] }
 0x100   :  { %v2416_v55 = vsel %vm526_vm14, 1.0, %v3092_v13  ;;  %v2889_v4 = vpack.i.bf16 %v990_v59, %v1006_v16  ;;  %v2884_v28 = vpack.i.bf16 %v989_v62, %v1005_v63  ;;  %v2384_v59 = vsel %vm494_vm10, 1.0, %v3092_v13  ;;  %v715_v42 = vld [vmem:[%s4643_s1 + $0x1d8] sm:$0xff] }
 0x101   :  { %2670 = vmatmul.mubr.msk.f32.gmra.mrb[18].mxu0 %vm1426_vm1, %v2371_v25  ;;  %2733 = vmatmul.mubr.msk.f32.gmra.mrb[18].mxu1 %vm1426_vm1, %v2413_v22  ;;  %v3857_v30 = vpop.permute.xlu1 %724  ;;  %v2379_v25 = vsel %vm489_vm5, 1.0, %v3092_v13  ;;  %v1026_v22 = vld [vmem:[%s4645_s3 + $0x190] sm:$0xff]  ;;  %v2385_v63 = vsel %vm495_vm11, 1.0, %v3092_v13  ;;  %vm498_vm14 = vcmp.eq.s32.totalorder %v3533_v27, %v3352_v7  ;;  %vm500_vm0 = vcmp.eq.s32.totalorder %v3543_v35, %v3352_v7 }
 0x102   :  { %2672 = vmatprep.mubr.msk.f32.mxu0 %vm1426_vm1, %v2372_v44  ;;  %2735 = vmatprep.mubr.msk.f32.mxu1 %vm1426_vm1, %v2414_v32  ;;  %v3864_v49 = vpop.permute.xlu0 %721  ;;  %v2909_v32 = vpack.i.bf16 %v1010_v60, %v1026_v22  ;;  %v2388_v27 = vsel %vm498_vm14, 1.0, %v3092_v13  ;;  %v1018_v22 = vld [vmem:[%s4645_s3 + $0x150] sm:$0xff]  ;;  %vm504_vm5 = vcmp.eq.s32.totalorder %v3563_v51, %v3352_v7  ;;  %v1036_v51 = vld [vmem:[%s4645_s3 + $0x1e0] sm:$0xff] }
 0x103   :  { %2860 = vperm.xlu1 %2818, %v2859_v9   ;;  %2855 = vperm.xlu0 %2817, %v2854_v14   ;;  %v2899_v14 = vpack.i.bf16 %v1008_v56, %v1024_v40  ;;  %v1034_v35 = vld [vmem:[%s4645_s3 + $0x1d0] sm:$0xff] }
 0x105   :  { %2673 = vmatmul.mubr.msk.f32.gmra.mrb[20].mxu0 %vm1426_vm1, %v2373_v29  ;;  %2736 = vmatmul.mubr.msk.f32.gmra.mrb[20].mxu1 %vm1426_vm1, %v2415_v46  ;;  %v3897_v58 = vpop.permute.xlu1 %730  ;;  %v1027_v29 = vld [vmem:[%s4645_s3 + $0x198] sm:$0xff]  ;;  %v2382_v46 = vsel %vm492_vm8, 1.0, %v3092_v13  ;;  %vm913_vm8 = vcmp.eq.s32.totalorder %v3857_v30, %v3352_v7 }
 0x106   :  { %2675 = vmatprep.mubr.msk.f32.mxu0 %vm1426_vm1, %v2374_v48  ;;  %2738 = vmatprep.mubr.msk.f32.mxu1 %vm1426_vm1, %v2416_v55  ;;  %v3903_v53 = vpop.permute.xlu0 %727  ;;  %v2914_v48 = vpack.i.bf16 %v1011_v6, %v1027_v29  ;;  %v2383_v55 = vsel %vm493_vm9, 1.0, %v3092_v13  ;;  %v2954_v29 = vpack.i.bf16 %v1019_v0, %v1035_v43 }
 0x107   :  { %2870 = vperm.xlu1 %2818, %v2869_v38   ;;  %2865 = vperm.xlu0 %2817, %v2864_v37   ;;  %v2904_v38 = vpack.i.bf16 %v1009_v1, %v1025_v23  ;;  %v2381_v37 = vsel %vm491_vm7, 1.0, %v3092_v13  ;;  %v2390_v1 = vsel %vm500_vm0, 1.0, %v3092_v13  ;;  %vm914_vm10 = vcmp.eq.s32.totalorder %v3903_v53, %v3352_v7 }
 0x109   :  { %2676 = vmatmul.mubr.msk.f32.gmra.mrb[22].mxu0 %vm1426_vm1, %v2375_v41  ;;  %2739 = vmatmul.mubr.msk.f32.gmra.mrb[22].mxu1 %vm1426_vm1, %v2417_v57  ;;  %v3927_v21 = vpop.permute.xlu1 %736 }
 0x10a   :  { %2678 = vmatprep.mubr.msk.f32.mxu0 %vm1426_vm1, %v2376_v52  ;;  %v3932_v2 = vpop.permute.xlu0 %733  ;;  %v1032_v52 = vld [vmem:[%s4645_s3 + $0x1c0] sm:$0xff]  ;;  %vm917_vm13 = vcmp.eq.s32.totalorder %v3927_v21, %v3352_v7 }
 0x10b   :  { %2880 = vperm.xlu1 %2818, %v2879_v36   ;;  %2875 = vperm.xlu0 %2817, %v2874_v10   ;;  %v1030_v36 = vld [vmem:[%s4645_s3 + $0x1b0] sm:$0xff]  ;;  %v1029_v10 = vld [vmem:[%s4645_s3 + $0x1a8] sm:$0xff]  ;;  %v2939_v40 = vpack.i.bf16 %v1016_v11, %v1032_v52  ;;  %v4148_v11 = vpop.f32.mrb[0].mxu0  ;;  %vm916_vm14 = vcmp.eq.s32.totalorder %v3932_v2, %v3352_v7 }
 0x10c   :  { %v2929_v16 = vpack.i.bf16 %v1014_v5, %v1030_v36  ;;  %v2924_v62 = vpack.i.bf16 %v1013_v12, %v1029_v10  ;;  %v2395_v12 = vsel %vm505_vm6, 1.0, %v3092_v13  ;;  %v716_v10 = vld [vmem:[%s4643_s1 + $0x1e0] sm:$0xff]  ;;  %4653 = vst [vmem:[#allocation8_spill] sm:$0xff] %v4148_v11  ;;  %v717_v52 = vld [vmem:[%s4643_s1 + $0x1e8] sm:$0xff] }
 0x10d   :  { %2679 = vmatmul.mubr.msk.f32.gmra.mrb[24].mxu0 %vm1426_vm1, %v2377_v8  ;;  %v3951_v45 = vpop.permute.xlu1 %742 }
 0x10e   :  { %2681 = vmatprep.mubr.msk.f32.mxu0 %vm1426_vm1, %v2378_v33  ;;  %v3956_v9 = vpop.permute.xlu0 %739  ;;  %v1033_v33 = vld [vmem:[%s4645_s3 + $0x1c8] sm:$0xff] }
 0x10f   :  { %2890 = vperm.xlu1 %2818, %v2889_v4   ;;  %2885 = vperm.xlu0 %2817, %v2884_v28   ;;  %v1031_v4 = vld [vmem:[%s4645_s3 + $0x1b8] sm:$0xff]  ;;  %v2386_v28 = vsel %vm496_vm12, 1.0, %v3092_v13  ;;  %v2944_v60 = vpack.i.bf16 %v1017_v18, %v1033_v33  ;;  %vm915_vm12 = vcmp.eq.s32.totalorder %v3897_v58, %v3352_v7 }
 0x110   :  { %v2934_v61 = vpack.i.bf16 %v1015_v19, %v1031_v4  ;;  %v1022_v19 = vld [vmem:[%s4645_s3 + $0x170] sm:$0xff]  ;;  %v1023_v18 = vld [vmem:[%s4645_s3 + $0x178] sm:$0xff] }
 0x111   :  { %2682 = vmatmul.mubr.msk.f32.gmra.mrb[26].mxu0 %vm1426_vm1, %v2379_v25  ;;  %v3975_v31 = vpop.permute.xlu1 %748  ;;  %v2389_v25 = vsel %vm499_vm15, 1.0, %v3092_v13  ;;  %v1038_v4 = vld [vmem:[%s4645_s3 + $0x1f0] sm:$0xff]  ;;  %v1039_v33 = vld [vmem:[%s4645_s3 + $0x1f8] sm:$0xff]  ;;  %vm919_vm15 = vcmp.eq.s32.totalorder %v3951_v45, %v3352_v7 }
 0x112   :  { %2684 = vmatprep.mubr.msk.f32.mxu0 %vm1426_vm1, %v2380_v24  ;;  %v3980_v44 = vpop.permute.xlu0 %745 }
 0x113   :  { %2900 = vperm.xlu1 %2818, %v2899_v14   ;;  %2895 = vperm.xlu0 %2817, %v2894_v15  }
 0x115   :  { %2685 = vmatmul.mubr.msk.f32.gmra.mrb[28].mxu0 %vm1426_vm1, %v2381_v37  ;;  %v3999_v47 = vpop.permute.xlu1 %754  ;;  %v2392_v37 = vsel %vm502_vm3, 1.0, %v3092_v13  ;;  %vm920_vm3 = vcmp.eq.s32.totalorder %v3980_v44, %v3352_v7 }
 0x116   :  { %2687 = vmatprep.mubr.msk.f32.mxu0 %vm1426_vm1, %v2382_v46  ;;  %v4004_v17 = vpop.permute.xlu0 %751  ;;  %v2393_v46 = vsel %vm503_vm4, 1.0, %v3092_v13 }
 0x117   :  { %2910 = vperm.xlu1 %2818, %v2909_v32   ;;  %2905 = vperm.xlu0 %2817, %v2904_v38   ;;  %v2949_v32 = vpack.i.bf16 %v1018_v22, %v1034_v35  ;;  %v2391_v38 = vsel %vm501_vm2, 1.0, %v3092_v13  ;;  %vm918_vm2 = vcmp.eq.s32.totalorder %v3956_v9, %v3352_v7 }
 0x119   :  { %2688 = vmatmul.mubr.msk.f32.gmra.mrb[30].mxu0 %vm1426_vm1, %v2383_v55  ;;  %v4023_v41 = vpop.permute.xlu1 %760 }
 0x11a   :  { %2690 = vmatprep.mubr.msk.f32.mxu0 %vm1426_vm1, %v2384_v59  ;;  %v4028_v57 = vpop.permute.xlu0 %757  ;;  %v1037_v59 = vld [vmem:[%s4645_s3 + $0x1e8] sm:$0xff] }
 0x11b   :  { %2920 = vperm.xlu1 %2818, %v2919_v54   ;;  %2915 = vperm.xlu0 %2817, %v2914_v48   ;;  %v1020_v54 = vld [vmem:[%s4645_s3 + $0x160] sm:$0xff]  ;;  %v2394_v48 = vsel %vm504_vm5, 1.0, %v3092_v13  ;;  %v2964_v13 = vpack.i.bf16 %v1021_v50, %v1037_v59 }
 0x11c   :  { %v2959_v36 = vpack.i.bf16 %v1020_v54, %v1036_v51 }
 0x11d   :  { %2691 = vmatmul.mubr.msk.f32.gmra.mrb[32].mxu0 %vm1426_vm1, %v2385_v63  ;;  %v4047_v56 = vpop.permute.xlu1 %766  ;;  %v4150_v63 = vpop.f32.mrb[1].mxu0 }
 0x11e   :  { %2693 = vmatprep.mubr.msk.f32.mxu0 %vm1426_vm1, %v2386_v28  ;;  %v4052_v8 = vpop.permute.xlu0 %763  ;;  %4654 = vst [vmem:[#allocation9_spill] sm:$0xff] %v4150_v63 }
 0x11f   :  { %2930 = vperm.xlu1 %2818, %v2929_v16   ;;  %2925 = vperm.xlu0 %2817, %v2924_v62  }
 0x121   :  { %2694 = vmatmul.mubr.msk.f32.gmra.mrb[34].mxu0 %vm1426_vm1, %v2387_v20  ;;  %v4065_v14 = vpop.permute.xlu1 %772  ;;  %v718_v20 = vld [vmem:[%s4643_s1 + $0x1f0] sm:$0xff] }
 0x122   :  { %2696 = vmatprep.mubr.msk.f32.mxu0 %vm1426_vm1, %v2388_v27  ;;  %v4070_v15 = vpop.permute.xlu0 %769  ;;  %vm929_vm9 = vcmp.eq.s32.totalorder %v4065_v14, %v3352_v7 }
 0x123   :  { %2940 = vperm.xlu1 %2818, %v2939_v40   ;;  %2935 = vperm.xlu0 %2817, %v2934_v61   ;;  %v2969_v61 = vpack.i.bf16 %v1022_v19, %v1038_v4  ;;  %vm928_vm7 = vcmp.eq.s32.totalorder %v4070_v15, %v3352_v7 }
 0x125   :  { %2697 = vmatmul.mubr.msk.f32.gmra.mrb[36].mxu0 %vm1426_vm1, %v2389_v25  ;;  %v4086_v23 = vpop.permute.xlu1 %778  ;;  %v2974_v25 = vpack.i.bf16 %v1023_v18, %v1039_v33 }
 0x126   :  { %2699 = vmatprep.mubr.msk.f32.mxu0 %vm1426_vm1, %v2390_v1  ;;  %v4091_v24 = vpop.permute.xlu0 %775  ;;  %vm931_vm0 = vcmp.eq.s32.totalorder %v4086_v23, %v3352_v7 }
 0x127   :  { %2945 = vperm.xlu1 %2818, %v2944_v60   ;;  %892 = vperm.xlu0 %2817, %v713_v26   ;;  %v719_v26 = vld [vmem:[%s4643_s1 + $0x1f8] sm:$0xff]  ;;  %vm930_vm11 = vcmp.eq.s32.totalorder %v4091_v24, %v3352_v7 }
 0x129   :  { %2700 = vmatmul.mubr.msk.f32.gmra.mrb[38].mxu0 %vm1426_vm1, %v2391_v38  ;;  %v4107_v39 = vpop.permute.xlu1 %784 }
 0x12a   :  { %2702 = vmatprep.mubr.msk.f32.mxu0 %vm1426_vm1, %v2392_v37  ;;  %v4112_v6 = vpop.permute.xlu0 %781  ;;  %vm933_vm6 = vcmp.eq.s32.totalorder %v4107_v39, %v3352_v7 }
 0x12b   :  { %2950 = vperm.xlu1 %2818, %v2949_v32   ;;  %895 = vperm.xlu0 %2817, %v714_v34   ;;  %vm932_vm4 = vcmp.eq.s32.totalorder %v4112_v6, %v3352_v7 }
 0x12d   :  { %2703 = vmatmul.mubr.msk.f32.gmra.mrb[40].mxu0 %vm1426_vm1, %v2393_v46  ;;  %v4128_v5 = vpop.permute.xlu1 %790 }
 0x12e   :  { %2705 = vmatprep.mubr.msk.f32.mxu0 %vm1426_vm1, %v2394_v48  ;;  %v4131_v55 = vpop.permute.xlu0 %787 }
 0x12f   :  { %2955 = vperm.xlu1 %2818, %v2954_v29   ;;  %898 = vperm.xlu0 %2817, %v715_v42   ;;  %vm934_vm5 = vcmp.eq.s32.totalorder %v4131_v55, %v3352_v7 }
 0x131   :  { %2706 = vmatmul.mubr.msk.f32.gmra.mrb[42].mxu0 %vm1426_vm1, %v2395_v12  ;;  %v4144_v16 = vpop.permute.xlu1 %796  ;;  %vm912_vm1 = vcmp.eq.s32.totalorder %v3864_v49, %v3352_v7 }
 0x132   :  { %v4146_v62 = vpop.permute.xlu0 %793 }
 0x133   :  { %2960 = vperm.xlu1 %2818, %v2959_v36   ;;  %901 = vperm.xlu0 %2817, %v716_v10  }
 0x135   :  { %v4161_v28 = vpop.permute.xlu1 %802 }
 0x136   :  { %v4163_v40 = vpop.permute.xlu0 %799 }
 0x137   :  { %2965 = vperm.xlu1 %2818, %v2964_v13   ;;  %904 = vperm.xlu0 %2817, %v717_v52  }
 0x139   :  { %v4174_v27 = vpop.permute.xlu1 %808 }
 0x13a   :  { %v4176_v60 = vpop.permute.xlu0 %805 }
 0x13b   :  { %2970 = vperm.xlu1 %2818, %v2969_v61   ;;  %907 = vperm.xlu0 %2817, %v718_v20  }
 0x13d   :  { %v4181_v22 = vpop.permute.xlu1 %814 }
 0x13e   :  { %v4183_v35 = vpop.permute.xlu0 %811 }
 0x13f   :  { %2975 = vperm.xlu1 %2818, %v2974_v25   ;;  %910 = vperm.xlu0 %2817, %v719_v26  }
 0x141   :  { %v4185_v1 = vpop.permute.xlu1 %820 }
 0x142   :  { %v4187_v32 = vpop.permute.xlu0 %817 }
 0x145   :  { %v4189_v38 = vpop.permute.xlu1 %826 }
 0x146   :  { %v4191_v34 = vpop.permute.xlu0 %823 }
 0x149   :  { %v4193_v0 = vpop.permute.xlu1 %832 }
 0x14a   :  { %v4195_v43 = vpop.permute.xlu0 %829 }
 0x14d   :  { %v4197_v37 = vpop.permute.xlu1 %838 }
 0x14e   :  { %v4199_v29 = vpop.permute.xlu0 %835 }
 0x151   :  { %v4201_v46 = vpop.permute.xlu1 %844 }
 0x152   :  { %v4203_v42 = vpop.permute.xlu0 %841 }
 0x155   :  { %v4205_v54 = vpop.permute.xlu1 %850 }
 0x156   :  { %4655 = vst [vmem:[#allocation10_spill] sm:$0xff] %v4205_v54  ;;  %v4207_v51 = vpop.permute.xlu0 %847 }
 0x157   :  { %4656 = vst [vmem:[#allocation11_spill] sm:$0xff] %v4207_v51 }
 0x159   :  { %v4209_v48 = vpop.permute.xlu1 %856 }
 0x15a   :  { %4657 = vst [vmem:[#allocation12_spill] sm:$0xff] %v4209_v48  ;;  %v4211_v36 = vpop.permute.xlu0 %853 }
 0x15b   :  { %4658 = vst [vmem:[#allocation13_spill] sm:$0xff] %v4211_v36 }
 0x15e   :  { %v4213_v12 = vpop.permute.xlu1 %862  ;;  %v4215_v10 = vpop.permute.xlu0 %859 }
 0x15f   :  { %4659 = vst [vmem:[#allocation14_spill] sm:$0xff] %v4213_v12  ;;  %4660 = vst [vmem:[#allocation15_spill] sm:$0xff] %v4215_v10 }
 0x162   :  { %v4217_v50 = vpop.permute.xlu1 %868  ;;  %v4219_v59 = vpop.permute.xlu0 %865 }
 0x166   :  { %v4221_v13 = vpop.permute.xlu1 %874  ;;  %v4223_v52 = vpop.permute.xlu0 %871 }
 0x16a   :  { %v4225_v19 = vpop.permute.xlu1 %880  ;;  %v4227_v4 = vpop.permute.xlu0 %877 }
 0x16e   :  { %v4229_v61 = vpop.permute.xlu1 %886  ;;  %v4231_v20 = vpop.permute.xlu0 %883 }
 0x172   :  { %v2821_v18 = vpop.permute.xlu1 %2820  ;;  %v4233_v33 = vpop.permute.xlu0 %889 }
 0x173   :  { %v2823_v25 = vunpack.i.h.bf16 %v2821_v18  ;;  %v2822_v26 = vunpack.i.l.bf16 %v2821_v18 }
 0x175   :  { %v1360_v3 = vsel %vm912_vm1, %v2823_v25, 0.0  ;;  %v1376_v11 = vsel %vm928_vm7, %v2822_v26, 0.0  ;;  %vm935_vm1 = vcmp.eq.s32.totalorder %v4128_v5, %v3352_v7  ;;  %vm936_vm7 = vcmp.eq.s32.totalorder %v4146_v62, %v3352_v7 }
 0x176   :  { %v2979_v63 = vpack.i.bf16 %v1360_v3, %v1376_v11  ;;  %v2831_v12 = vpop.permute.xlu1 %2830  ;;  %v2826_v10 = vpop.permute.xlu0 %2825 }
 0x177   :  { %v2833_v48 = vunpack.i.h.bf16 %v2831_v12  ;;  %v2832_v36 = vunpack.i.l.bf16 %v2831_v12  ;;  %v2828_v54 = vunpack.i.h.bf16 %v2826_v10  ;;  %v2827_v51 = vunpack.i.l.bf16 %v2826_v10 }
 0x178   :  { %2980 = vxpose.xlu0.b32.start [1/16] (narrow) %v2979_v63, 16 }
 0x179   :  { %v1361_v49 = vsel %vm913_vm8, %v2828_v54, 0.0  ;;  %v1377_v18 = vsel %vm929_vm9, %v2827_v51, 0.0  ;;  %v1362_v12 = vsel %vm914_vm10, %v2833_v48, 0.0  ;;  %v1378_v10 = vsel %vm930_vm11, %v2832_v36, 0.0 }
 0x17a   :  { %v2981_v3 = vpack.i.bf16 %v1361_v49, %v1377_v18  ;;  %v2841_v15 = vpop.permute.xlu1 %2840  ;;  %v2836_v11 = vpop.permute.xlu0 %2835  ;;  %v2983_v53 = vpack.i.bf16 %v1362_v12, %v1378_v10  ;;  %vm921_vm8 = vcmp.eq.s32.totalorder %v3975_v31, %v3352_v7  ;;  %vm922_vm9 = vcmp.eq.s32.totalorder %v4004_v17, %v3352_v7 }
 0x17b   :  { %v2838_v25 = vunpack.i.h.bf16 %v2836_v11  ;;  %v2837_v26 = vunpack.i.l.bf16 %v2836_v11  ;;  %v2843_v30 = vunpack.i.h.bf16 %v2841_v15  ;;  %v2842_v14 = vunpack.i.l.bf16 %v2841_v15 }
 0x17c   :  { %2982 = vxpose.xlu0.b32.cont [2/16] (narrow) %v2981_v3, 16  ;;  %vm937_vm10 = vcmp.eq.s32.totalorder %v4144_v16, %v3352_v7  ;;  %vm938_vm11 = vcmp.eq.s32.totalorder %v4163_v40, %v3352_v7 }
 0x17d   :  { %v1363_v54 = vsel %vm915_vm12, %v2838_v25, 0.0  ;;  %v1379_v51 = vsel %vm931_vm0, %v2837_v26, 0.0  ;;  %v1364_v2 = vsel %vm916_vm14, %v2843_v30, 0.0  ;;  %v1380_v23 = vsel %vm932_vm4, %v2842_v14, 0.0 }
 0x17e   :  { %v2851_v24 = vpop.permute.xlu1 %2850  ;;  %v2846_v63 = vpop.permute.xlu0 %2845  ;;  %v2985_v18 = vpack.i.bf16 %v1363_v54, %v1379_v51  ;;  %v2987_v55 = vpack.i.bf16 %v1364_v2, %v1380_v23  ;;  %vm923_vm12 = vcmp.eq.s32.totalorder %v3999_v47, %v3352_v7  ;;  %vm939_vm14 = vcmp.eq.s32.totalorder %v4161_v28, %v3352_v7 }
 0x17f   :  { %v2853_v58 = vunpack.i.h.bf16 %v2851_v24  ;;  %v2852_v48 = vunpack.i.l.bf16 %v2851_v24  ;;  %v2848_v3 = vunpack.i.h.bf16 %v2846_v63  ;;  %v2847_v15 = vunpack.i.l.bf16 %v2846_v63 }
 0x180   :  { %2984 = vxpose.xlu0.b32.cont [3/16] (narrow) %v2983_v53, 16  ;;  %vm925_vm0 = vcmp.eq.s32.totalorder %v4023_v41, %v3352_v7  ;;  %vm942_vm4 = vcmp.eq.s32.totalorder %v4183_v35, %v3352_v7 }
 0x181   :  { %v4265_v36 = vsel %vm918_vm2, %v2853_v58, 0.0  ;;  %v4267_v49 = vsel %vm934_vm5, %v2852_v48, 0.0  ;;  %v1365_v5 = vsel %vm917_vm13, %v2848_v3, 0.0  ;;  %v1381_v62 = vsel %vm933_vm6, %v2847_v15, 0.0 }
 0x182   :  { %v2991_v9 = vpack.i.bf16 %v4265_v36, %v4267_v49  ;;  %v2861_v11 = vpop.permute.xlu1 %2860  ;;  %v2856_v12 = vpop.permute.xlu0 %2855  ;;  %v2989_v3 = vpack.i.bf16 %v1365_v5, %v1381_v62  ;;  %vm924_vm13 = vcmp.eq.s32.totalorder %v4028_v57, %v3352_v7  ;;  %vm926_vm2 = vcmp.eq.s32.totalorder %v4052_v8, %v3352_v7 }
 0x183   :  { %v2863_v10 = vunpack.i.h.bf16 %v2861_v11  ;;  %v2862_v6 = vunpack.i.l.bf16 %v2861_v11  ;;  %v2858_v25 = vunpack.i.h.bf16 %v2856_v12  ;;  %v2857_v26 = vunpack.i.l.bf16 %v2856_v12 }
 0x184   :  { %2986 = vxpose.xlu0.b32.cont [4/16] (narrow) %v2985_v18, 16  ;;  %vm927_vm5 = vcmp.eq.s32.totalorder %v4047_v56, %v3352_v7  ;;  %vm943_vm6 = vcmp.eq.s32.totalorder %v4181_v22, %v3352_v7 }
 0x185   :  { %v4280_v30 = vsel %vm920_vm3, %v2863_v10, 0.0  ;;  %v4282_v14 = vsel %vm936_vm7, %v2862_v6, 0.0  ;;  %v4287_v53 = vsel %vm919_vm15, %v2858_v25, 0.0  ;;  %v4289_v39 = vsel %vm935_vm1, %v2857_v26, 0.0 }
 0x186   :  { %v2995_v24 = vpack.i.bf16 %v4280_v30, %v4282_v14  ;;  %v2993_v44 = vpack.i.bf16 %v4287_v53, %v4289_v39  ;;  %v2871_v63 = vpop.permute.xlu1 %2870  ;;  %v2866_v54 = vpop.permute.xlu0 %2865  ;;  %vm940_vm15 = vcmp.eq.s32.totalorder %v4176_v60, %v3352_v7  ;;  %vm941_vm3 = vcmp.eq.s32.totalorder %v4174_v27, %v3352_v7 }
 0x187   :  { %v2873_v51 = vunpack.i.h.bf16 %v2871_v63  ;;  %v2872_v58 = vunpack.i.l.bf16 %v2871_v63  ;;  %v2868_v45 = vunpack.i.h.bf16 %v2866_v54  ;;  %v2867_v48 = vunpack.i.l.bf16 %v2866_v54 }
 0x188   :  { %2988 = vxpose.xlu0.b32.cont [5/16] (narrow) %v2987_v55, 16  ;;  %vm944_vm1 = vcmp.eq.s32.totalorder %v4187_v32, %v3352_v7  ;;  %vm960_vm7 = vcmp.eq.s32.totalorder %v4219_v59, %v3352_v7 }
 0x189   :  { %v4306_v21 = vsel %vm922_vm9, %v2873_v51, 0.0  ;;  %v4308_v2 = vsel %vm938_vm11, %v2872_v58, 0.0  ;;  %v4310_v23 = vsel %vm921_vm8, %v2868_v45, 0.0  ;;  %v4312_v18 = vsel %vm937_vm10, %v2867_v48, 0.0 }
 0x18a   :  { %v2999_v31 = vpack.i.bf16 %v4306_v21, %v4308_v2  ;;  %v2997_v17 = vpack.i.bf16 %v4310_v23, %v4312_v18  ;;  %v2881_v16 = vpop.permute.xlu1 %2880  ;;  %v2876_v15 = vpop.permute.xlu0 %2875  ;;  %vm945_vm8 = vcmp.eq.s32.totalorder %v4185_v1, %v3352_v7  ;;  %vm961_vm9 = vcmp.eq.s32.totalorder %v4217_v50, %v3352_v7 }
 0x18b   :  { %v2883_v11 = vunpack.i.h.bf16 %v2881_v16  ;;  %v2882_v40 = vunpack.i.l.bf16 %v2881_v16  ;;  %v2878_v12 = vunpack.i.h.bf16 %v2876_v15  ;;  %v2877_v10 = vunpack.i.l.bf16 %v2876_v15 }
 0x18c   :  { %2990 = vxpose.xlu0.b32.cont [6/16] (narrow) %v2989_v3, 16  ;;  %vm946_vm10 = vcmp.eq.s32.totalorder %v4191_v34, %v3352_v7  ;;  %vm962_vm11 = vcmp.eq.s32.totalorder %v4223_v52, %v3352_v7 }
 0x18d   :  { %v4326_v6 = vsel %vm924_vm13, %v2883_v11, 0.0  ;;  %v4328_v25 = vsel %vm940_vm15, %v2882_v40, 0.0  ;;  %v4330_v26 = vsel %vm923_vm12, %v2878_v12, 0.0  ;;  %v4332_v55 = vsel %vm939_vm14, %v2877_v10, 0.0 }
 0x18e   :  { %v3003_v47 = vpack.i.bf16 %v4326_v6, %v4328_v25  ;;  %v3001_v57 = vpack.i.bf16 %v4330_v26, %v4332_v55  ;;  %v2891_v5 = vpop.permute.xlu1 %2890  ;;  %v2886_v28 = vpop.permute.xlu0 %2885  ;;  %vm947_vm12 = vcmp.eq.s32.totalorder %v4189_v38, %v3352_v7  ;;  %vm963_vm13 = vcmp.eq.s32.totalorder %v4221_v13, %v3352_v7 }
 0x18f   :  { %v2893_v62 = vunpack.i.h.bf16 %v2891_v5  ;;  %v2892_v63 = vunpack.i.l.bf16 %v2891_v5  ;;  %v2888_v60 = vunpack.i.h.bf16 %v2886_v28  ;;  %v2887_v54 = vunpack.i.l.bf16 %v2886_v28 }
 0x190   :  { %2992 = vxpose.xlu0.b32.cont [7/16] (narrow) %v2991_v9, 16  ;;  %vm948_vm14 = vcmp.eq.s32.totalorder %v4195_v43, %v3352_v7  ;;  %vm949_vm15 = vcmp.eq.s32.totalorder %v4193_v0, %v3352_v7 }
 0x191   :  { %v4349_v51 = vsel %vm926_vm2, %v2893_v62, 0.0  ;;  %v4351_v58 = vsel %vm942_vm4, %v2892_v63, 0.0  ;;  %v4353_v45 = vsel %vm925_vm0, %v2888_v60, 0.0  ;;  %v4355_v41 = vsel %vm941_vm3, %v2887_v54, 0.0 }
 0x192   :  { %v3007_v8 = vpack.i.bf16 %v4349_v51, %v4351_v58  ;;  %v3005_v27 = vpack.i.bf16 %v4353_v45, %v4355_v41  ;;  %v2901_v48 = vpop.permute.xlu1 %2900  ;;  %v2896_v35 = vpop.permute.xlu0 %2895  ;;  %vm951_vm0 = vcmp.eq.s32.totalorder %v4197_v37, %v3352_v7  ;;  %vm964_vm2 = vcmp.eq.s32.totalorder %v4227_v4, %v3352_v7 }
 0x193   :  { %v2903_v3 = vunpack.i.h.bf16 %v2901_v48  ;;  %v2902_v16 = vunpack.i.l.bf16 %v2901_v48  ;;  %v2898_v36 = vunpack.i.h.bf16 %v2896_v35  ;;  %v2897_v49 = vunpack.i.l.bf16 %v2896_v35 }
 0x194   :  { %2994 = vxpose.xlu0.b32.cont [8/16] (narrow) %v2993_v44, 16  ;;  %vm952_vm3 = vcmp.eq.s32.totalorder %v4203_v42, %v3352_v7  ;;  %vm967_vm4 = vcmp.eq.s32.totalorder %v4229_v61, %v3352_v7 }
 0x195   :  { %v1392_v9 = vsel %vm944_vm1, %v2903_v3, 0.0  ;;  %v1408_v15 = vsel %vm960_vm7, %v2902_v16, 0.0  ;;  %v4372_v11 = vsel %vm927_vm5, %v2898_v36, 0.0  ;;  %v4374_v40 = vsel %vm943_vm6, %v2897_v49, 0.0 }
 0x196   :  { %v3021_v56 = vpack.i.bf16 %v1392_v9, %v1408_v15  ;;  %v3009_v22 = vpack.i.bf16 %v4372_v11, %v4374_v40  ;;  %v2911_v12 = vpop.permute.xlu1 %2910  ;;  %v2906_v10 = vpop.permute.xlu0 %2905  ;;  %vm968_vm5 = vcmp.eq.s32.totalorder %v4233_v33, %v3352_v7  ;;  %vm965_vm6 = vcmp.eq.s32.totalorder %v4225_v19, %v3352_v7 }
 0x197   :  { %v2913_v32 = vunpack.i.h.bf16 %v2911_v12  ;;  %v2912_v5 = vunpack.i.l.bf16 %v2911_v12  ;;  %v2908_v28 = vunpack.i.h.bf16 %v2906_v10  ;;  %v2907_v59 = vunpack.i.l.bf16 %v2906_v10 }
 0x198   :  { %3022 = vxpose.xlu1.b32.start [1/16] (narrow) %v3021_v56, 16  ;;  %2996 = vxpose.xlu0.b32.cont [9/16] (narrow) %v2995_v24, 16  ;;  %vm950_vm1 = vcmp.eq.s32.totalorder %v4199_v29, %v3352_v7  ;;  %vm966_vm7 = vcmp.eq.s32.totalorder %v4231_v20, %v3352_v7 }
 0x199   :  { %v1393_v53 = vsel %vm945_vm8, %v2908_v28, 0.0  ;;  %v1409_v39 = vsel %vm961_vm9, %v2907_v59, 0.0  ;;  %v1394_v1 = vsel %vm946_vm10, %v2913_v32, 0.0  ;;  %v1410_v60 = vsel %vm962_vm11, %v2912_v5, 0.0 }
 0x19a   :  { %v3023_v44 = vpack.i.bf16 %v1393_v53, %v1409_v39  ;;  %v2921_v62 = vpop.permute.xlu1 %2920  ;;  %v2916_v63 = vpop.permute.xlu0 %2915  ;;  %v3025_v34 = vpack.i.bf16 %v1394_v1, %v1410_v60  ;;  %vm953_vm9 = vcmp.eq.s32.totalorder %v4201_v46, %v3352_v7  ;;  %v4661_v1 = vld [vmem:[#allocation11_spill] sm:$0xff] }
 0x19b   :  { %v2918_v54 = vunpack.i.h.bf16 %v2916_v63  ;;  %v2917_v50 = vunpack.i.l.bf16 %v2916_v63  ;;  %v2923_v30 = vunpack.i.h.bf16 %v2921_v62  ;;  %v2922_v52 = vunpack.i.l.bf16 %v2921_v62 }
 0x19c   :  { %3024 = vxpose.xlu1.b32.cont [2/16] (narrow) %v3023_v44, 16  ;;  %2998 = vxpose.xlu0.b32.cont [10/16] (narrow) %v2997_v17, 16  ;;  %vm954_vm11 = vcmp.eq.s32.totalorder %v4661_v1, %v3352_v7 }
 0x19d   :  { %v1395_v48 = vsel %vm947_vm12, %v2918_v54, 0.0  ;;  %v1411_v35 = vsel %vm963_vm13, %v2917_v50, 0.0  ;;  %v1396_v38 = vsel %vm948_vm14, %v2923_v30, 0.0  ;;  %v1412_v13 = vsel %vm964_vm2, %v2922_v52, 0.0 }
 0x19e   :  { %v2931_v14 = vpop.permute.xlu1 %2930  ;;  %v2926_v24 = vpop.permute.xlu0 %2925  ;;  %v3027_v23 = vpack.i.bf16 %v1395_v48, %v1411_v35  ;;  %v3029_v42 = vpack.i.bf16 %v1396_v38, %v1412_v13  ;;  %v4662_v13 = vld [vmem:[#allocation10_spill] sm:$0xff] }
 0x19f   :  { %v2928_v18 = vunpack.i.h.bf16 %v2926_v24  ;;  %v2927_v17 = vunpack.i.l.bf16 %v2926_v24  ;;  %v2933_v12 = vunpack.i.h.bf16 %v2931_v14  ;;  %v2932_v10 = vunpack.i.l.bf16 %v2931_v14 }
 0x1a0   :  { %3026 = vxpose.xlu1.b32.cont [3/16] (narrow) %v3025_v34, 16  ;;  %3000 = vxpose.xlu0.b32.cont [11/16] (narrow) %v2999_v31, 16  ;;  %vm955_vm13 = vcmp.eq.s32.totalorder %v4662_v13, %v3352_v7 }
 0x1a1   :  { %v1397_v26 = vsel %vm949_vm15, %v2928_v18, 0.0  ;;  %v1413_v55 = vsel %vm965_vm6, %v2927_v17, 0.0  ;;  %v1398_v32 = vsel %vm950_vm1, %v2933_v12, 0.0  ;;  %v1414_v5 = vsel %vm966_vm7, %v2932_v10, 0.0 }
 0x1a2   :  { %v2941_v43 = vpop.permute.xlu1 %2940  ;;  %v2936_v3 = vpop.permute.xlu0 %2935  ;;  %v3031_v37 = vpack.i.bf16 %v1397_v26, %v1413_v55  ;;  %v3033_v0 = vpack.i.bf16 %v1398_v32, %v1414_v5  ;;  %v4664_v32 = vld [vmem:[#allocation12_spill] sm:$0xff] }
 0x1a3   :  { %v2943_v16 = vunpack.i.h.bf16 %v2941_v43  ;;  %v2942_v36 = vunpack.i.l.bf16 %v2941_v43  ;;  %v2938_v21 = vunpack.i.h.bf16 %v2936_v3  ;;  %v2937_v2 = vunpack.i.l.bf16 %v2936_v3 }
 0x1a4   :  { %3028 = vxpose.xlu1.b32.cont [4/16] (narrow) %v3027_v23, 16  ;;  %3002 = vxpose.xlu0.b32.cont [12/16] (narrow) %v3001_v57, 16  ;;  %vm957_vm2 = vcmp.eq.s32.totalorder %v4664_v32, %v3352_v7 }
 0x1a5   :  { %v1400_v4 = vsel %vm952_vm3, %v2943_v16, 0.0  ;;  %v1416_v31 = vsel %vm968_vm5, %v2942_v36, 0.0  ;;  %v1399_v49 = vsel %vm951_vm0, %v2938_v21, 0.0  ;;  %v1415_v9 = vsel %vm967_vm4, %v2937_v2, 0.0 }
 0x1a6   :  { %v3037_v61 = vpack.i.bf16 %v1400_v4, %v1416_v31  ;;  %v3035_v15 = vpack.i.bf16 %v1399_v49, %v1415_v9  ;;  %v2946_v56 = vpop.permute.xlu1 %2945  ;;  %v893_v33 = vpop.permute.xlu0 %892 }
 0x1a7   :  { %v2948_v25 = vunpack.i.h.bf16 %v2946_v56  ;;  %vm969_vm8 = vcmp.eq.s32.totalorder %v893_v33, %v3352_v7 }
 0x1a8   :  { %3030 = vxpose.xlu1.b32.cont [5/16] (narrow) %v3029_v42, 16  ;;  %3004 = vxpose.xlu0.b32.cont [13/16] (narrow) %v3003_v47, 16  ;;  %v2947_v47 = vunpack.i.l.bf16 %v2946_v56  ;;  %v4663_v42 = vld [vmem:[#allocation13_spill] sm:$0xff] }
 0x1a9   :  { %vm956_vm15 = vcmp.eq.s32.totalorder %v4663_v42, %v3352_v7 }
 0x1aa   :  { %v2951_v19 = vpop.permute.xlu1 %2950  ;;  %v896_v57 = vpop.permute.xlu0 %895 }
 0x1ab   :  { %v2953_v39 = vunpack.i.h.bf16 %v2951_v19  ;;  %v2952_v44 = vunpack.i.l.bf16 %v2951_v19  ;;  %vm970_vm10 = vcmp.eq.s32.totalorder %v896_v57, %v3352_v7 }
 0x1ac   :  { %3032 = vxpose.xlu1.b32.cont [6/16] (narrow) %v3031_v37, 16  ;;  %3006 = vxpose.xlu0.b32.cont [14/16] (narrow) %v3005_v27, 16  ;;  %v1417_v27 = vsel %vm969_vm8, %v2947_v47, 0.0 }
 0x1ad   :  { %v1402_v30 = vsel %vm954_vm11, %v2953_v39, 0.0  ;;  %v1418_v34 = vsel %vm970_vm10, %v2952_v44, 0.0 }
 0x1ae   :  { %v2956_v28 = vpop.permute.xlu1 %2955  ;;  %v899_v6 = vpop.permute.xlu0 %898  ;;  %v3041_v23 = vpack.i.bf16 %v1402_v30, %v1418_v34 }
 0x1af   :  { %v2958_v52 = vunpack.i.h.bf16 %v2956_v28  ;;  %v2957_v14 = vunpack.i.l.bf16 %v2956_v28  ;;  %vm971_vm12 = vcmp.eq.s32.totalorder %v899_v6, %v3352_v7 }
 0x1b0   :  { %3034 = vxpose.xlu1.b32.cont [7/16] (narrow) %v3033_v0, 16  ;;  %3008 = vxpose.xlu0.b32.cont [15/16] (narrow) %v3007_v8, 16  ;;  %v1401_v8 = vsel %vm953_vm9, %v2948_v25, 0.0 }
 0x1b1   :  { %v3039_v60 = vpack.i.bf16 %v1401_v8, %v1417_v27  ;;  %v1403_v43 = vsel %vm955_vm13, %v2958_v52, 0.0  ;;  %v1419_v3 = vsel %vm971_vm12, %v2957_v14, 0.0 }
 0x1b2   :  { %v2961_v29 = vpop.permute.xlu1 %2960  ;;  %v902_v20 = vpop.permute.xlu0 %901 }
 0x1b3   :  { %v2963_v16 = vunpack.i.h.bf16 %v2961_v29  ;;  %v2962_v36 = vunpack.i.l.bf16 %v2961_v29  ;;  %vm972_vm14 = vcmp.eq.s32.totalorder %v902_v20, %v3352_v7 }
 0x1b4   :  { %v4438_v59 = vpop.f32.mrb[2].mxu0  ;;  %v4440_v53 = vpop.f32.mrb[2].mxu1  ;;  %3036 = vxpose.xlu1.b32.cont [8/16] (narrow) %v3035_v15, 16  ;;  %3010 = vxpose.xlu0.b32.end [16/16] (narrow) %v3009_v22, 16 }
 0x1b5   :  { %v4445_v45 = vpop.f32.mrb[3].mxu0  ;;  %v4447_v41 = vpop.f32.mrb[3].mxu1  ;;  %v1404_v33 = vsel %vm956_vm15, %v2963_v16, 0.0  ;;  %v1420_v12 = vsel %vm972_vm14, %v2962_v36, 0.0  ;;  %v4666_v36 = vld [vmem:[#allocation14_spill] sm:$0xff] }
 0x1b6   :  { %v2747_v51 = vpack.c.bf16 %v4438_v59, %v4445_v45  ;;  %v2799_v58 = vpack.c.bf16 %v4440_v53, %v4447_v41  ;;  %v2966_v62 = vpop.permute.xlu1 %2965  ;;  %v905_v11 = vpop.permute.xlu0 %904  ;;  %v3045_v5 = vpack.i.bf16 %v1404_v33, %v1420_v12  ;;  %vm959_vm6 = vcmp.eq.s32.totalorder %v4666_v36, %v3352_v7 }
 0x1b7   :  { %v2968_v10 = vunpack.i.h.bf16 %v2966_v62  ;;  %v2967_v26 = vunpack.i.l.bf16 %v2966_v62  ;;  %vm973_vm0 = vcmp.eq.s32.totalorder %v905_v11, %v3352_v7  ;;  %v4665_v11 = vld [vmem:[#allocation15_spill] sm:$0xff] }
 0x1b8   :  { %v4456_v40 = vpop.f32.mrb[4].mxu0  ;;  %v4458_v22 = vpop.f32.mrb[4].mxu1  ;;  %3038 = vxpose.xlu1.b32.cont [9/16] (narrow) %v3037_v61, 16  ;;  %v3043_v61 = vpack.i.bf16 %v1403_v43, %v1419_v3  ;;  %vm958_vm4 = vcmp.eq.s32.totalorder %v4665_v11, %v3352_v7 }
 0x1b9   :  { %v4460_v46 = vpop.f32.mrb[5].mxu0  ;;  %v4462_v63 = vpop.f32.mrb[5].mxu1  ;;  %v1405_v6 = vsel %vm957_vm2, %v2968_v10, 0.0  ;;  %v1421_v29 = vsel %vm973_vm0, %v2967_v26, 0.0 }
 0x1ba   :  { %v2751_v54 = vpack.c.bf16 %v4456_v40, %v4460_v46  ;;  %v2803_v50 = vpack.c.bf16 %v4458_v22, %v4462_v63  ;;  %v2971_v21 = vpop.permute.xlu1 %2970  ;;  %v908_v2 = vpop.permute.xlu0 %907  ;;  %v3047_v1 = vpack.i.bf16 %v1405_v6, %v1421_v29  ;;  %v3093_v22 = vmov 32  }
 0x1bb   :  { %v2973_v20 = vunpack.i.h.bf16 %v2971_v21  ;;  %v2972_v25 = vunpack.i.l.bf16 %v2971_v21  ;;  %vm974_vm3 = vcmp.eq.s32.totalorder %v908_v2, %v3352_v7 }
 0x1bc   :  { %v4471_v24 = vpop.f32.mrb[6].mxu0  ;;  %v4473_v48 = vpop.f32.mrb[6].mxu1  ;;  %3040 = vxpose.xlu1.b32.cont [10/16] (narrow) %v3039_v60, 16 }
 0x1bd   :  { %v4475_v35 = vpop.f32.mrb[7].mxu0  ;;  %v4477_v38 = vpop.f32.mrb[7].mxu1  ;;  %v1406_v34 = vsel %vm958_vm4, %v2973_v20, 0.0  ;;  %v1422_v52 = vsel %vm974_vm3, %v2972_v25, 0.0 }
 0x1be   :  { %v2755_v18 = vpack.c.bf16 %v4471_v24, %v4475_v35  ;;  %v2807_v17 = vpack.c.bf16 %v4473_v48, %v4477_v38  ;;  %v2976_v47 = vpop.permute.xlu1 %2975  ;;  %v911_v8 = vpop.permute.xlu0 %910  ;;  %v3049_v21 = vpack.i.bf16 %v1406_v34, %v1422_v52 }
 0x1bf   :  { %v2978_v14 = vunpack.i.h.bf16 %v2976_v47  ;;  %v2977_v13 = vunpack.i.l.bf16 %v2976_v47  ;;  %vm975_vm5 = vcmp.eq.s32.totalorder %v911_v8, %v3352_v7 }
 0x1c0   :  { %v4486_v4 = vpop.f32.mrb[8].mxu0  ;;  %v4488_v31 = vpop.f32.mrb[8].mxu1  ;;  %3042 = vxpose.xlu1.b32.cont [11/16] (narrow) %v3041_v23, 16 }
 0x1c1   :  { %v4490_v49 = vpop.f32.mrb[9].mxu0  ;;  %v4492_v9 = vpop.f32.mrb[9].mxu1  ;;  %v1423_v33 = vsel %vm975_vm5, %v2977_v13, 0.0 }
 0x1c2   :  { %v2759_v15 = vpack.c.bf16 %v4486_v4, %v4490_v49  ;;  %v2777_v56 = vpack.c.bf16 %v4488_v31, %v4492_v9 }
 0x1c4   :  { %v4501_v55 = vpop.f32.mrb[10].mxu0  ;;  %v4503_v37 = vpop.f32.mrb[10].mxu1  ;;  %3044 = vxpose.xlu1.b32.cont [12/16] (narrow) %v3043_v61, 16  ;;  %v1407_v61 = vsel %vm959_vm6, %v2978_v14, 0.0 }
 0x1c5   :  { %v4505_v19 = vpop.f32.mrb[11].mxu0  ;;  %v4507_v57 = vpop.f32.mrb[11].mxu1 }
 0x1c6   :  { %v2763_v0 = vpack.c.bf16 %v4501_v55, %v4505_v19  ;;  %v2781_v28 = vpack.c.bf16 %v4503_v37, %v4507_v57 }
 0x1c8   :  { %v4516_v27 = vpop.f32.mrb[12].mxu0  ;;  %v4518_v39 = vpop.f32.mrb[12].mxu1  ;;  %3046 = vxpose.xlu1.b32.cont [13/16] (narrow) %v3045_v5, 16  ;;  %v3051_v5 = vpack.i.bf16 %v1407_v61, %v1423_v33 }
 0x1c9   :  { %v4520_v44 = vpop.f32.mrb[13].mxu0  ;;  %v4522_v62 = vpop.f32.mrb[13].mxu1 }
 0x1ca   :  { %v2767_v60 = vpack.c.bf16 %v4516_v27, %v4520_v44  ;;  %v2785_v30 = vpack.c.bf16 %v4518_v39, %v4522_v62 }
 0x1cc   :  { %v4531_v23 = vpop.f32.mrb[14].mxu0  ;;  %v4533_v43 = vpop.f32.mrb[14].mxu1  ;;  %3048 = vxpose.xlu1.b32.cont [14/16] (narrow) %v3047_v1, 16 }
 0x1cd   :  { %v1745_v3 = vpop.f32.mrb[15].mxu0  ;;  %v4535_v16 = vpop.f32.mrb[15].mxu1 }
 0x1ce   :  { %v2771_v2 = vpack.c.bf16 %v4531_v23, %v1745_v3  ;;  %v2789_v42 = vpack.c.bf16 %v4533_v43, %v4535_v16 }
 0x1d0   :  { %v2668_v12 = vpop.f32.mrb[16].mxu0  ;;  %v4542_v10 = vpop.f32.mrb[16].mxu1  ;;  %3050 = vxpose.xlu1.b32.cont [15/16] (narrow) %v3049_v21, 16 }
 0x1d1   :  { %v1755_v26 = vpop.f32.mrb[17].mxu0  ;;  %v4544_v32 = vpop.f32.mrb[17].mxu1 }
 0x1d2   :  { %v2775_v6 = vpack.c.bf16 %v2668_v12, %v1755_v26  ;;  %v2793_v7 = vpack.c.bf16 %v4542_v10, %v4544_v32 }
 0x1d4   :  { %v2671_v29 = vpop.f32.mrb[18].mxu0  ;;  %v4548_v20 = vpop.f32.mrb[18].mxu1  ;;  %3052 = vxpose.xlu1.b32.end [16/16] (narrow) %v3051_v5, 16 }
 0x1d5   :  { %v1765_v25 = vpop.f32.mrb[19].mxu0  ;;  %v4550_v47 = vpop.f32.mrb[19].mxu1 }
 0x1d6   :  { %v2745_v8 = vpack.c.bf16 %v2671_v29, %v1765_v25  ;;  %v2797_v11 = vpack.c.bf16 %v4548_v20, %v4550_v47  ;;  %v2309_v20 = vld [vmem:[%s4649_s7] sm:$0xff]  ;;  %v4667_v47 = vmov 0  }
 0x1d8   :  { %v2674_v1 = vpop.f32.mrb[20].mxu0  ;;  %v4554_v34 = vpop.f32.mrb[20].mxu1  ;;  %2746 = vmatprep.subr.bf16.mxu1 %v2745_v8 }
 0x1d9   :  { %v1775_v52 = vpop.f32.mrb[21].mxu0  ;;  %v4556_v14 = vpop.f32.mrb[21].mxu1  ;;  %2748 = vmatpush3.bf16.msra.mxu1 %v2747_v51 }
 0x1da   :  { %v2749_v13 = vpack.c.bf16 %v2674_v1, %v1775_v52  ;;  %v2801_v23 = vpack.c.bf16 %v4554_v34, %v4556_v14  ;;  %v4668_v14 = vld [vmem:[#allocation9_spill] sm:$0xff] }
 0x1dc   :  { %v2677_v3 = vpop.f32.mrb[22].mxu0  ;;  %v4563_v36 = vpop.f32.mrb[22].mxu1  ;;  %2750 = vmatprep.subr.bf16.mxu1 %v2749_v13 }
 0x1dd   :  { %v1785_v21 = vpop.f32.mrb[23].mxu0  ;;  %v4565_v61 = vpop.f32.mrb[23].mxu1  ;;  %2752 = vmatpush3.bf16.msra.mxu1 %v2751_v54  ;;  %3063 = vset.pattern.permute.xlu0 %v3093_v22 }
 0x1de   :  { %v2753_v33 = vpack.c.bf16 %v2677_v3, %v1785_v21  ;;  %v2805_v59 = vpack.c.bf16 %v4563_v36, %v4565_v61 }
 0x1e0   :  { %v2680_v45 = vpop.f32.mrb[24].mxu0  ;;  %2754 = vmatprep.subr.bf16.mxu1 %v2753_v33 }
 0x1e1   :  { %v1795_v51 = vpop.f32.mrb[25].mxu0  ;;  %2756 = vmatpush3.bf16.msra.mxu1 %v2755_v18 }
 0x1e2   :  { %v2757_v12 = vpack.c.bf16 %v2680_v45, %v1795_v51 }
 0x1e4   :  { %v2683_v26 = vpop.f32.mrb[26].mxu0  ;;  %2758 = vmatprep.subr.bf16.mxu1 %v2757_v12 }
 0x1e5   :  { %v1805_v5 = vpop.f32.mrb[27].mxu0  ;;  %2760 = vmatpush3.bf16.msra.mxu1 %v2759_v15 }
 0x1e6   :  { %v2761_v40 = vpack.c.bf16 %v2683_v26, %v1805_v5  ;;  %v2482_v26 = vld [vmem:[%s4648_s6] ss:$0 sm:$0xff] }
 0x1e8   :  { %v2686_v46 = vpop.f32.mrb[28].mxu0  ;;  %2762 = vmatprep.subr.bf16.mxu1 %v2761_v40 }
 0x1e9   :  { %v1815_v54 = vpop.f32.mrb[29].mxu0  ;;  %2764 = vmatpush3.bf16.msra.mxu1 %v2763_v0 }
 0x1ea   :  { %v2765_v29 = vpack.c.bf16 %v2686_v46, %v1815_v54 }
 0x1ec   :  { %v2689_v25 = vpop.f32.mrb[30].mxu0  ;;  %2766 = vmatprep.subr.bf16.mxu1 %v2765_v29 }
 0x1ed   :  { %v1825_v24 = vpop.f32.mrb[31].mxu0  ;;  %2768 = vmatpush3.bf16.msra.mxu1 %v2767_v60 }
 0x1ee   :  { %v2769_v35 = vpack.c.bf16 %v2689_v25, %v1825_v24 }
 0x1f0   :  { %v2692_v18 = vpop.f32.mrb[32].mxu0  ;;  %2770 = vmatprep.subr.bf16.mxu1 %v2769_v35 }
 0x1f1   :  { %v1835_v4 = vpop.f32.mrb[33].mxu0  ;;  %2772 = vmatpush3.bf16.msra.mxu1 %v2771_v2 }
 0x1f2   :  { %v2773_v49 = vpack.c.bf16 %v2692_v18, %v1835_v4  ;;  %3064 = vset.pattern.permute.xlu1 %v3093_v22 }
 0x1f4   :  { %v2695_v15 = vpop.f32.mrb[34].mxu0  ;;  %2774 = vmatprep.subr.bf16.mxu1 %v2773_v49 }
 0x1f5   :  { %v1845_v8 = vpop.f32.mrb[35].mxu0  ;;  %2776 = vmatpush3.bf16.msra.mxu1 %v2775_v6 }
 0x1f6   :  { %v2779_v55 = vpack.c.bf16 %v2695_v15, %v1845_v8  ;;  %2778 = vmatprep.subr.bf16.mxu1 %v2777_v56 }
 0x1f8   :  { %v2698_v19 = vpop.f32.mrb[36].mxu0  ;;  %v3011_v0 = vpop.trf.xlu0 }
 0x1f9   :  { %v3015_v1 = vunpack.i.h.bf16 %v3011_v0  ;;  %v1855_v27 = vpop.f32.mrb[37].mxu0  ;;  %v3012_v44 = vunpack.i.l.bf16 %v3011_v0 }
 0x1fa   :  { %v2783_v60 = vpack.c.bf16 %v2698_v19, %v1855_v27 }
 0x1fb   :  { %2198 = vmatprep.mubr.f32.mxu1 %v3012_v44 }
 0x1fc   :  { %v2701_v52 = vpop.f32.mrb[38].mxu0  ;;  %2199 = vmatmul.mubr.f32.vlgmr.msra.gmra.mrb[24].mxu1 %v3015_v1  ;;  %v3016_v2 = vpop.trf.xlu0 }
 0x1fd   :  { %v1865_v13 = vpop.f32.mrb[39].mxu0  ;;  %2780 = vmatpush3.bf16.msra.mxu1 %v2779_v55  ;;  %v3017_v3 = vunpack.i.l.bf16 %v3016_v2  ;;  %v3020_v21 = vunpack.i.h.bf16 %v3016_v2 }
 0x1fe   :  { %v2787_v6 = vpack.c.bf16 %v2701_v52, %v1865_v13  ;;  %2782 = vmatprep.subr.bf16.mxu1 %v2781_v28 }
 0x1ff   :  { %2203 = vmatprep.mubr.f32.mxu1 %v3017_v3 }
 0x200   :  { %v2704_v31 = vpop.f32.mrb[40].mxu0  ;;  %2204 = vmatmul.mubr.f32.gmra.mrb[26].mxu1 %v3020_v21 }
 0x201   :  { %v1875_v9 = vpop.f32.mrb[41].mxu0  ;;  %2784 = vmatpush3.bf16.msra.mxu1 %v2783_v60 }
 0x202   :  { %v2791_v56 = vpack.c.bf16 %v2704_v31, %v1875_v9  ;;  %2786 = vmatprep.subr.bf16.mxu1 %v2785_v30 }
 0x204   :  { %v2707_v33 = vpop.f32.mrb[42].mxu0 }
 0x205   :  { %v1885_v45 = vpop.f32.mrb[43].mxu0  ;;  %2788 = vmatpush3.bf16.msra.mxu1 %v2787_v6 }
 0x206   :  { %v2795_v51 = vpack.c.bf16 %v2707_v33, %v1885_v45  ;;  %2790 = vmatprep.subr.bf16.mxu1 %v2789_v42 }
 0x209   :  { %2792 = vmatpush3.bf16.msra.mxu1 %v2791_v56 }
 0x20a   :  { %2794 = vmatprep.subr.bf16.mxu1 %v2793_v7 }
 0x20d   :  { %2796 = vmatpush3.bf16.msra.mxu1 %v2795_v51 }
 0x20e   :  { %2798 = vmatprep.subr.bf16.mxu1 %v2797_v11  ;;  %v2310_v11 = vld [vmem:[%s4649_s7 + $0x8] sm:$0xff]  ;;  %s3094_s7 = smov [#allocation5]  }
 0x20f   :  { %s2339_s16 = sshll.u32 %s3094_s7, 4  ;;  %s2340_s16 = int_to_ptr.vmem [resolvable:$true] %s2339_s16 }
 0x210   :  { %s3067_s17 = scalar_lea.vmem %s2340_s16, 256  ;;  %p3072_p1 = scmp.lt.s32.totalorder %s2340_s16, %s2340_s16 }
 0x211   :  { %2800 = vmatpush3.bf16.msra.mxu1 %v2799_v58  ;;  %p3068_p0 = scmp.ne.s32.totalorder %s2340_s16, %s3067_s17  ;;  %p3073_p2 = scmp.lt.s32.totalorder %s3067_s17, %s3067_s17 }
 0x212   :  { %2802 = vmatprep.subr.bf16.mxu1 %v2801_v23 }
 0x213   :  { %p3074_p3 = por %p3073_p2, %p3072_p1 }
 0x215   :  { %2804 = vmatpush3.bf16.msra.mxu1 %v2803_v50  ;;  %p3075_p4 = pnand %p3074_p3, %p3068_p0 }
 0x216   :  { %2806 = vmatprep.subr.bf16.mxu1 %v2805_v59  ;;  %v4669_v59 = vld [vmem:[#allocation8_spill] sm:$0xff] }
 0x218   :  { %v3053_v37 = vpop.trf.xlu1 }
 0x219   :  { %v3057_v57 = vunpack.i.h.bf16 %v3053_v37  ;;  %2808 = vmatpush3.bf16.msra.mxu1 %v2807_v17  ;;  %v3054_v53 = vunpack.i.l.bf16 %v3053_v37 }
 0x21b   :  { %2273 = vmatprep.mubr.f32.mxu1 %v3054_v53 }
 0x21c   :  { %v3058_v41 = vpop.trf.xlu1  ;;  %2274 = vmatmul.mubr.f32.vlgmr.msra.gmra.mrb[28].mxu1 %v3057_v57 }
 0x21d   :  { %v3059_v58 = vunpack.i.l.bf16 %v3058_v41  ;;  %v3062_v28 = vunpack.i.h.bf16 %v3058_v41 }
 0x21f   :  { %2278 = vmatprep.mubr.f32.mxu1 %v3059_v58 }
 0x220   :  { %2279 = vmatmul.mubr.f32.gmra.mrb[30].mxu1 %v3062_v28 }
 0x2cf   :  { %v2587_v63 = vpop.f32.mrb[24].mxu1 }
 0x2d0   :  { %v2588_v50 = vpop.f32.mrb[25].mxu1 }
 0x2d1   :  { %v2589_v39 = vadd.f32 %v2588_v50, %v2587_v63 }
 0x2d3   :  { %v2590_v62 = vpop.f32.mrb[26].mxu1 }
 0x2d4   :  { %v2591_v30 = vpop.f32.mrb[27].mxu1 }
 0x2d5   :  { %v2592_v43 = vadd.f32 %v2591_v30, %v2590_v62 }
 0x2ef   :  { %v2625_v16 = vpop.f32.mrb[28].mxu1 }
 0x2f0   :  { %v2626_v48 = vpop.f32.mrb[29].mxu1 }
 0x2f1   :  { %v2627_v38 = vadd.f32 %v2626_v48, %v2625_v16 }
 0x2f3   :  { %v2276_v17 = vadd.f32 %v2627_v38, %v2589_v39  ;;  %v2628_v42 = vpop.f32.mrb[30].mxu1 }
 0x2f4   :  { %v2629_v10 = vpop.f32.mrb[31].mxu1 }
 0x2f5   :  { %v2630_v32 = vadd.f32 %v2629_v10, %v2628_v42  ;;  %2297 = vperm.xlu0 %3063, %v2276_v17  }
 0x2f7   :  { %v2281_v7 = vadd.f32 %v2630_v32, %v2592_v43 }
 0x2f9   :  { %2302 = vperm.xlu1 %3064, %v2281_v7   ;;  %3065 = vset.pattern.permute.xlu0 %v4667_v47 }
 0x2fa   :  { %2313 = vperm.xlu0 %3065, %v2309_v20  }
 0x2fd   :  { %3066 = vset.pattern.permute.xlu1 %v4667_v47 }
 0x2fe   :  { %2318 = vperm.xlu1 %3066, %v2310_v11  }
 0x374   :  { %v2298_v34 = vpop.permute.xlu0 %2297 }
 0x375   :  { %v2305_v23 = vmul.f32 %v2298_v34, %v4668_v14 }
 0x377   :  { %v2307_v36 = vadd.f32 %v2305_v23, %v2276_v17 }
 0x378   :  { %v2303_v61 = vpop.permute.xlu1 %2302 }
 0x379   :  { %v2306_v12 = vmul.f32 %v4669_v59, %v2303_v61  ;;  %v2314_v5 = vpop.permute.xlu0 %2313 }
 0x37a   :  { %v2321_v40 = vmul.f32 %v2314_v5, %v2307_v36 }
 0x37b   :  { %v2308_v46 = vadd.f32 %v2306_v12, %v2281_v7 }
 0x37c   :  { %v2330_v54 = vadd.f32 %v2482_v26, %v2321_v40 }
 0x37d   :  { %v2319_v29 = vpop.permute.xlu1 %2318 }
 0x37e   :  { %2332 = vst [vmem:[#allocation5] sm:$0xff] %v2330_v54  ;;  %v2322_v25 = vmul.f32 %v2319_v29, %v2308_v46 }
 0x380   :  { %v2331_v24 = vadd.f32 %v2482_v26, %v2322_v25 }
 0x382   :  { %2333 = vst [vmem:[#allocation5 + $0x8] sm:$0xff] %v2331_v24 }
 0x383   :  { %3078 = shalt.err (!%p3075_p4)
}
 0x384   :  { %s3079_s0 = scalar_lea.hbm %s4650_s8, 256 }
 0x385   :  { %p3080_p5 = scmp.ne.s32.totalorder %s4650_s8, %s3079_s0  ;;  %p3083_p6 = scmp.lt.u32.totalorder %s3079_s0, %s4650_s8 }
 0x387   :  { %p3085_p7 = pnand %p3083_p6, %p3080_p5 }
 0x389   :  { %3088 = shalt.err (!%p3085_p7)
}
 0x38a   :  { %s3095_s21 = smov 128   ;;  %s3096_s22 = smov 8  }
 0x38b   :  { %2345 = dma.vmem_to_hbm [thread:$0]  %s2340_s16, 256, %s4650_s8, [#allocation6], %s3095_s21, %s3095_s21, %s3096_s22  }
 0x38c   :  { %3089 = dma.done.wait [#allocation6], 256  }
 0x38d   :  { %3090 = vsyncadd [#allocation6], 4294967040 }
 0x38e   :  { %2349 = vsyncpa [#allocation6], 1 }

</bundles_post_ra>
